<compile_context>
chip_gen: v5e
topology: v5e:2x2
jax: 0.10.0
libtpu: 0.0.40
codegen_flags: <defaults>
</compile_context>

<pallas_src>
import functools

import jax
import jax.numpy as jnp
from jax.experimental import pallas as pl
from jax.experimental.pallas import tpu as pltpu


def _round_up(x, m):
    return (x + m - 1) // m * m


# ----------------------------------------------------------------------------
# Fused tower kernel: patch-embed GEMM -> LN -> GEMM -> act -> GEMM -> residual
# ----------------------------------------------------------------------------
def _tower_kernel(*refs, eps, quick_gelu):
    # refs = (xp, pe_w, pe_b, ln_g, ln_b, w1, b1, w2, b2, [alias_hbm], out)
    (xp_ref, pew_ref, peb_ref, g_ref, be_ref,
     w1_ref, b1_ref, w2_ref, b2_ref) = refs[:9]
    o_ref = refs[-1]

    # Patch embedding: [TM, Kp](bf16) @ [Kp, H](bf16) -> f32 acc
    x = jnp.dot(xp_ref[...], pew_ref[...],
                preferred_element_type=jnp.float32) + peb_ref[...]

    # LayerNorm (f32 statistics)
    mu = jnp.mean(x, axis=-1, keepdims=True)
    var = jnp.mean((x - mu) * (x - mu), axis=-1, keepdims=True)
    xn = (x - mu) * jax.lax.rsqrt(var + eps)
    xn = xn * g_ref[...] + be_ref[...]

    # MLP: bf16 operands into the MXU, f32 accumulation.
    h = jnp.dot(xn.astype(jnp.bfloat16), w1_ref[...],
                preferred_element_type=jnp.float32) + b1_ref[...]
    if quick_gelu:
        # CLIP quick_gelu: x * sigmoid(1.702 x)   (EUP logistic)
        h = h * jax.nn.sigmoid(1.702 * h)
    else:
        # TODO(synk): PyTorch nn.GELU default is exact erf; tanh approximation
        # used here (EUP tanh path).
        h = jax.nn.gelu(h, approximate=True)
    y = jnp.dot(h.astype(jnp.bfloat16), w2_ref[...],
                preferred_element_type=jnp.float32) + b2_ref[...]

    # Residual from the (pre-LN) patch embedding, f32, cast to output dtype.
    o_ref[...] = (x + y).astype(o_ref.dtype)


# ----------------------------------------------------------------------------
# pallas_call wrapper: grid over tokens, weights VMEM-resident, column-offset
# writes into the shared concatenated output buffer.
# ----------------------------------------------------------------------------
def _fused_tower(tok2d, params, *, dst, col_offset, out_cols,
                 eps, quick_gelu, tm, m_pad):
    M, K = tok2d.shape
    Kp = _round_up(K, 128)                       # lane-dense patch dim
    H = params["pe_w"].shape[1]
    F = params["w1"].shape[1]
    assert col_offset % H == 0, "column offset must be a multiple of tower H"
    col_block = col_offset // H

    # Pad tokens to (m_pad, Kp) and cast GEMM operands to bf16.
    xp = jnp.pad(tok2d.astype(jnp.bfloat16), ((0, m_pad - M), (0, Kp - K)))
    pe_w = jnp.pad(params["pe_w"].astype(jnp.bfloat16), ((0, Kp - K), (0, 0)))
    w1 = params["w1"].astype(jnp.bfloat16)
    w2 = params["w2"].astype(jnp.bfloat16)

    const2 = lambda i: (0, 0)                    # weights/LN: VMEM-resident
    in_specs = [
        pl.BlockSpec((tm, Kp), lambda i: (i, 0)),   # patch tiles stream over M
        pl.BlockSpec((Kp, H), const2),
        pl.BlockSpec((1, H), const2),
        pl.BlockSpec((1, H), const2),
        pl.BlockSpec((1, H), const2),
        pl.BlockSpec((H, F), const2),
        pl.BlockSpec((1, F), const2),
        pl.BlockSpec((F, H), const2),
        pl.BlockSpec((1, H), const2),
    ]
    args = [xp, pe_w, params["pe_b"], params["ln_g"], params["ln_b"],
            w1, params["b1"], w2, params["b2"]]

    io_aliases = {}
    if dst is not None:
        # Write into the previous tower's output buffer (no concat pass).
        in_specs.append(pl.BlockSpec(memory_space=pl.ANY))
        args.append(dst)
        io_aliases = {9: 0}

    kernel = functools.partial(_tower_kernel, eps=eps, quick_gelu=quick_gelu)
    return pl.pallas_call(
        kernel,
        out_shape=jax.ShapeDtypeStruct((m_pad, out_cols), jnp.float32),
        grid=(m_pad // tm,),
        in_specs=in_specs,
        out_specs=pl.BlockSpec((tm, H), lambda i: (i, col_block)),
        compiler_params=pltpu.CompilerParams(
            dimension_semantics=("parallel",),
            # leave headroom vs v7x's 64 MiB physical VMEM
            vmem_limit_bytes=48 * 1024 * 1024,
        ),
        input_output_aliases=io_aliases,
    )(*args)


# ----------------------------------------------------------------------------
# glue: NCHW -> unfolded patch tokens (matches Conv2d(kernel=stride=p))
# ----------------------------------------------------------------------------
def unfold_patches(images_nchw, p):
    B, C, Himg, Wimg = images_nchw.shape
    gh, gw = Himg // p, Wimg // p
    x = images_nchw.reshape(B, C, gh, p, gw, p)
    x = x.transpose(0, 2, 4, 1, 3, 5)          # [B, gh, gw, C, p, p]
    return x.reshape(B, gh * gw, C * p * p)    # [B, T, C*p*p]


def mix_vision_tower_forward(highres_images, lowres_images, hr_params,
                             lr_params, p_hr, p_lr):
    hr_tok = unfold_patches(highres_images, p_hr)   # [B, T, K_hr]
    lr_tok = unfold_patches(lowres_images, p_lr)    # [B, T, K_lr]
    B, T, _ = hr_tok.shape
    assert lr_tok.shape[:2] == (B, T), "both towers must emit the same tokens"

    M = B * T
    H_hr = hr_params["pe_w"].shape[1]
    H_lr = lr_params["pe_w"].shape[1]
    H_total = H_hr + H_lr

    # Token-axis tiling shared by both towers (same shared output buffer).
    m8 = _round_up(M, 8)
    tm = min(256, m8)
    m_pad = _round_up(M, tm)

    # highres (ConvNeXt-ish): LN eps 1e-6, tanh-GELU. Writes cols [0, H_hr).
    out = _fused_tower(hr_tok.reshape(M, -1), hr_params, dst=None,
                       col_offset=0, out_cols=H_total,
                       eps=1e-6, quick_gelu=False, tm=tm, m_pad=m_pad)
    # lowres (CLIP-ish): LN eps 1e-5, quick_gelu. Writes cols [H_hr, H_total)
    # directly into the same buffer (aliased) -> no concatenate pass.
    out = _fused_tower(lr_tok.reshape(M, -1), lr_params, dst=out,
                       col_offset=H_hr, out_cols=H_total,
                       eps=1e-5, quick_gelu=True, tm=tm, m_pad=m_pad)

    return out[:M].reshape(B, T, H_total)


# ----------------------------------------------------------------------------
# deterministic parameter init (f32 "master" weights; cast to bf16 at call)
# ----------------------------------------------------------------------------
def init_tower_params(key, patch_dim, hidden):
    ks = jax.random.split(key, 4)
    mlp = 4 * hidden
    return {
        "pe_w": 0.02 * jax.random.normal(ks[0], (patch_dim, hidden), jnp.float32),
        "pe_b": jnp.zeros((1, hidden), jnp.float32),
        "ln_g": jnp.ones((1, hidden), jnp.float32),
        "ln_b": jnp.zeros((1, hidden), jnp.float32),
        "w1": 0.02 * jax.random.normal(ks[1], (hidden, mlp), jnp.float32),
        "b1": jnp.zeros((1, mlp), jnp.float32),
        "w2": 0.02 * jax.random.normal(ks[2], (mlp, hidden), jnp.float32),
        "b2": jnp.zeros((1, hidden), jnp.float32),
    }


if __name__ == "__main__":
    key = jax.random.PRNGKey(0)
    k_hr_img, k_lr_img, k_hr_p, k_lr_p = jax.random.split(key, 4)

    B = 2
    # highres branch (ConvNeXt-ish): 32x32 image, patch/stride 8 -> 16 tokens
    P_HR, HID_HR = 8, 128
    highres_images = jax.random.normal(k_hr_img, (B, 3, 32, 32), jnp.float32)
    # lowres branch (CLIP-ish): 16x16 image, patch 4 -> 16 tokens (same T)
    P_LR, HID_LR = 4, 128
    lowres_images = jax.random.normal(k_lr_img, (B, 3, 16, 16), jnp.float32)

    hr_params = init_tower_params(k_hr_p, 3 * P_HR * P_HR, HID_HR)
    lr_params = init_tower_params(k_lr_p, 3 * P_LR * P_LR, HID_LR)

    fwd = jax.jit(functools.partial(mix_vision_tower_forward,
                                    p_hr=P_HR, p_lr=P_LR))
    out = fwd(highres_images, lowres_images, hr_params, lr_params)
    jax.block_until_ready(out)

    assert out.shape == (B, 16, HID_HR + HID_LR), out.shape
    assert out.dtype == jnp.float32
    assert bool(jnp.all(jnp.isfinite(out)))
    print("KERNEL_OK")
</pallas_src>

<mosaic_0001>
module attributes {stable_mosaic.version = 11 : i64} {
  func.func @_tower_kernel(%arg0: i32, %arg1: memref<32x256xbf16, #tpu.memory_space<vmem>>, %arg2: memref<256x128xbf16, #tpu.memory_space<vmem>>, %arg3: memref<1x128xf32, #tpu.memory_space<vmem>>, %arg4: memref<1x128xf32, #tpu.memory_space<vmem>>, %arg5: memref<1x128xf32, #tpu.memory_space<vmem>>, %arg6: memref<128x512xbf16, #tpu.memory_space<vmem>>, %arg7: memref<1x512xf32, #tpu.memory_space<vmem>>, %arg8: memref<512x128xbf16, #tpu.memory_space<vmem>>, %arg9: memref<1x128xf32, #tpu.memory_space<vmem>>, %arg10: memref<32x128xf32, #tpu.memory_space<vmem>>) attributes {dimension_semantics = [#tpu.dimension_semantics<parallel>], iteration_bounds = array<i64: 1>, scalar_prefetch = 0 : i64, scratch_operands = 0 : i64, tpu.core_type = #tpu.core_type<tc>, window_params = [{transform_indices = @transform_0, window_bounds = array<i64: 32, 256>}, {pipeline_mode = #tpu.pipeline_mode<synchronous>, transform_indices = @transform_1, window_bounds = array<i64: 256, 128>}, {pipeline_mode = #tpu.pipeline_mode<synchronous>, transform_indices = @transform_2, window_bounds = array<i64: 1, 128>}, {pipeline_mode = #tpu.pipeline_mode<synchronous>, transform_indices = @transform_3, window_bounds = array<i64: 1, 128>}, {pipeline_mode = #tpu.pipeline_mode<synchronous>, transform_indices = @transform_4, window_bounds = array<i64: 1, 128>}, {pipeline_mode = #tpu.pipeline_mode<synchronous>, transform_indices = @transform_5, window_bounds = array<i64: 128, 512>}, {pipeline_mode = #tpu.pipeline_mode<synchronous>, transform_indices = @transform_6, window_bounds = array<i64: 1, 512>}, {pipeline_mode = #tpu.pipeline_mode<synchronous>, transform_indices = @transform_7, window_bounds = array<i64: 512, 128>}, {pipeline_mode = #tpu.pipeline_mode<synchronous>, transform_indices = @transform_8, window_bounds = array<i64: 1, 128>}, {transform_indices = @transform_9, window_bounds = array<i64: 32, 128>}]} {
    %c0 = arith.constant 0 : index
    %c0_0 = arith.constant 0 : index
    %0 = vector.load %arg1[%c0, %c0_0] : memref<32x256xbf16, #tpu.memory_space<vmem>>, vector<32x256xbf16>
    %c0_1 = arith.constant 0 : index
    %c0_2 = arith.constant 0 : index
    %1 = vector.load %arg2[%c0_1, %c0_2] : memref<256x128xbf16, #tpu.memory_space<vmem>>, vector<256x128xbf16>
    %cst = arith.constant dense<0.000000e+00> : vector<32x128xf32>
    %2 = tpu.matmul %0, %1, %cst {dimension_numbers = #tpu.dot_dimension_numbers<[1], [0], [0], [1], [0, 0, 1, 1], [], []>} : vector<32x256xbf16>, vector<256x128xbf16>, vector<32x128xf32> -> vector<32x128xf32>
    %c0_3 = arith.constant 0 : index
    %c0_4 = arith.constant 0 : index
    %3 = vector.load %arg3[%c0_3, %c0_4] : memref<1x128xf32, #tpu.memory_space<vmem>>, vector<1x128xf32>
    %4 = vector.broadcast %3 : vector<1x128xf32> to vector<32x128xf32>
    %5 = arith.addf %2, %4 : vector<32x128xf32>
    %cst_5 = arith.constant dense<0.000000e+00> : vector<32xf32>
    %6 = vector.multi_reduction <add>, %5, %cst_5 [1] : vector<32x128xf32> to vector<32xf32>
    %7 = vector.shape_cast %6 : vector<32xf32> to vector<32x1xf32>
    %cst_6 = arith.constant 1.280000e+02 : f32
    %8 = vector.broadcast %cst_6 : f32 to vector<32x1xf32>
    %9 = arith.divf %7, %8 : vector<32x1xf32>
    %10 = vector.broadcast %9 : vector<32x1xf32> to vector<32x128xf32>
    %11 = arith.subf %5, %10 : vector<32x128xf32>
    %12 = vector.broadcast %9 : vector<32x1xf32> to vector<32x128xf32>
    %13 = arith.subf %5, %12 : vector<32x128xf32>
    %14 = arith.mulf %11, %13 : vector<32x128xf32>
    %cst_7 = arith.constant dense<0.000000e+00> : vector<32xf32>
    %15 = vector.multi_reduction <add>, %14, %cst_7 [1] : vector<32x128xf32> to vector<32xf32>
    %16 = vector.shape_cast %15 : vector<32xf32> to vector<32x1xf32>
    %cst_8 = arith.constant 1.280000e+02 : f32
    %17 = vector.broadcast %cst_8 : f32 to vector<32x1xf32>
    %18 = arith.divf %16, %17 : vector<32x1xf32>
    %19 = vector.broadcast %9 : vector<32x1xf32> to vector<32x128xf32>
    %20 = arith.subf %5, %19 : vector<32x128xf32>
    %cst_9 = arith.constant 9.99999997E-7 : f32
    %21 = vector.broadcast %cst_9 : f32 to vector<32x1xf32>
    %22 = arith.addf %18, %21 : vector<32x1xf32>
    %23 = math.rsqrt %22 : vector<32x1xf32>
    %24 = vector.broadcast %23 : vector<32x1xf32> to vector<32x128xf32>
    %25 = arith.mulf %20, %24 : vector<32x128xf32>
    %c0_10 = arith.constant 0 : index
    %c0_11 = arith.constant 0 : index
    %26 = vector.load %arg4[%c0_10, %c0_11] : memref<1x128xf32, #tpu.memory_space<vmem>>, vector<1x128xf32>
    %27 = vector.broadcast %26 : vector<1x128xf32> to vector<32x128xf32>
    %28 = arith.mulf %25, %27 : vector<32x128xf32>
    %c0_12 = arith.constant 0 : index
    %c0_13 = arith.constant 0 : index
    %29 = vector.load %arg5[%c0_12, %c0_13] : memref<1x128xf32, #tpu.memory_space<vmem>>, vector<1x128xf32>
    %30 = vector.broadcast %29 : vector<1x128xf32> to vector<32x128xf32>
    %31 = arith.addf %28, %30 : vector<32x128xf32>
    %32 = arith.truncf %31 : vector<32x128xf32> to vector<32x128xbf16>
    %c0_14 = arith.constant 0 : index
    %c0_15 = arith.constant 0 : index
    %33 = vector.load %arg6[%c0_14, %c0_15] : memref<128x512xbf16, #tpu.memory_space<vmem>>, vector<128x512xbf16>
    %cst_16 = arith.constant dense<0.000000e+00> : vector<32x512xf32>
    %34 = tpu.matmul %32, %33, %cst_16 {dimension_numbers = #tpu.dot_dimension_numbers<[1], [0], [0], [1], [0, 0, 1, 1], [], []>} : vector<32x128xbf16>, vector<128x512xbf16>, vector<32x512xf32> -> vector<32x512xf32>
    %c0_17 = arith.constant 0 : index
    %c0_18 = arith.constant 0 : index
    %35 = vector.load %arg7[%c0_17, %c0_18] : memref<1x512xf32, #tpu.memory_space<vmem>>, vector<1x512xf32>
    %36 = vector.broadcast %35 : vector<1x512xf32> to vector<32x512xf32>
    %37 = arith.addf %34, %36 : vector<32x512xf32>
    %38 = arith.mulf %37, %37 : vector<32x512xf32>
    %39 = arith.mulf %37, %38 : vector<32x512xf32>
    %cst_19 = arith.constant 4.471500e-02 : f32
    %40 = vector.broadcast %cst_19 : f32 to vector<32x512xf32>
    %41 = arith.mulf %40, %39 : vector<32x512xf32>
    %42 = arith.addf %37, %41 : vector<32x512xf32>
    %cst_20 = arith.constant 0.797884583 : f32
    %43 = vector.broadcast %cst_20 : f32 to vector<32x512xf32>
    %44 = arith.mulf %43, %42 : vector<32x512xf32>
    %45 = math.tanh %44 : vector<32x512xf32>
    %cst_21 = arith.constant 1.000000e+00 : f32
    %46 = vector.broadcast %cst_21 : f32 to vector<32x512xf32>
    %47 = arith.addf %46, %45 : vector<32x512xf32>
    %cst_22 = arith.constant 5.000000e-01 : f32
    %48 = vector.broadcast %cst_22 : f32 to vector<32x512xf32>
    %49 = arith.mulf %48, %47 : vector<32x512xf32>
    %50 = arith.mulf %37, %49 : vector<32x512xf32>
    %51 = arith.truncf %50 : vector<32x512xf32> to vector<32x512xbf16>
    %c0_23 = arith.constant 0 : index
    %c0_24 = arith.constant 0 : index
    %52 = vector.load %arg8[%c0_23, %c0_24] : memref<512x128xbf16, #tpu.memory_space<vmem>>, vector<512x128xbf16>
    %cst_25 = arith.constant dense<0.000000e+00> : vector<32x128xf32>
    %53 = tpu.matmul %51, %52, %cst_25 {dimension_numbers = #tpu.dot_dimension_numbers<[1], [0], [0], [1], [0, 0, 1, 1], [], []>} : vector<32x512xbf16>, vector<512x128xbf16>, vector<32x128xf32> -> vector<32x128xf32>
    %c0_26 = arith.constant 0 : index
    %c0_27 = arith.constant 0 : index
    %54 = vector.load %arg9[%c0_26, %c0_27] : memref<1x128xf32, #tpu.memory_space<vmem>>, vector<1x128xf32>
    %55 = vector.broadcast %54 : vector<1x128xf32> to vector<32x128xf32>
    %56 = arith.addf %53, %55 : vector<32x128xf32>
    %57 = arith.addf %5, %56 : vector<32x128xf32>
    %c0_28 = arith.constant 0 : index
    %c0_29 = arith.constant 0 : index
    %58 = vector.load %arg10[%c0_28, %c0_29] : memref<32x128xf32, #tpu.memory_space<vmem>>, vector<32x128xf32>
    tpu.vector_store %arg10[%c0_28, %c0_29], %57 {strides = array<i32>} : memref<32x128xf32, #tpu.memory_space<vmem>>, vector<32x128xf32>,
    return
  }
  func.func @transform_0(%arg0: i32) -> (i32, i32) {
    %c0_i32 = arith.constant 0 : i32
    %c0_i32_0 = arith.constant 0 : i32
    return %arg0, %c0_i32 : i32, i32
  }
  func.func @transform_1(%arg0: i32) -> (i32, i32) {
    %c0_i32 = arith.constant 0 : i32
    %c0_i32_0 = arith.constant 0 : i32
    %c0_i32_1 = arith.constant 0 : i32
    return %c0_i32, %c0_i32_0 : i32, i32
  }
  func.func @transform_2(%arg0: i32) -> (i32, i32) {
    %c0_i32 = arith.constant 0 : i32
    %c0_i32_0 = arith.constant 0 : i32
    %c0_i32_1 = arith.constant 0 : i32
    return %c0_i32, %c0_i32_0 : i32, i32
  }
  func.func @transform_3(%arg0: i32) -> (i32, i32) {
    %c0_i32 = arith.constant 0 : i32
    %c0_i32_0 = arith.constant 0 : i32
    %c0_i32_1 = arith.constant 0 : i32
    return %c0_i32, %c0_i32_0 : i32, i32
  }
  func.func @transform_4(%arg0: i32) -> (i32, i32) {
    %c0_i32 = arith.constant 0 : i32
    %c0_i32_0 = arith.constant 0 : i32
    %c0_i32_1 = arith.constant 0 : i32
    return %c0_i32, %c0_i32_0 : i32, i32
  }
  func.func @transform_5(%arg0: i32) -> (i32, i32) {
    %c0_i32 = arith.constant 0 : i32
    %c0_i32_0 = arith.constant 0 : i32
    %c0_i32_1 = arith.constant 0 : i32
    return %c0_i32, %c0_i32_0 : i32, i32
  }
  func.func @transform_6(%arg0: i32) -> (i32, i32) {
    %c0_i32 = arith.constant 0 : i32
    %c0_i32_0 = arith.constant 0 : i32
    %c0_i32_1 = arith.constant 0 : i32
    return %c0_i32, %c0_i32_0 : i32, i32
  }
  func.func @transform_7(%arg0: i32) -> (i32, i32) {
    %c0_i32 = arith.constant 0 : i32
    %c0_i32_0 = arith.constant 0 : i32
    %c0_i32_1 = arith.constant 0 : i32
    return %c0_i32, %c0_i32_0 : i32, i32
  }
  func.func @transform_8(%arg0: i32) -> (i32, i32) {
    %c0_i32 = arith.constant 0 : i32
    %c0_i32_0 = arith.constant 0 : i32
    %c0_i32_1 = arith.constant 0 : i32
    return %c0_i32, %c0_i32_0 : i32, i32
  }
  func.func @transform_9(%arg0: i32) -> (i32, i32) {
    %c0_i32 = arith.constant 0 : i32
    %c0_i32_0 = arith.constant 0 : i32
    return %arg0, %c0_i32 : i32, i32
  }
}

module attributes {stable_mosaic.version = 11 : i64} {
  func.func @_tower_kernel(%arg0: i32, %arg1: memref<32x128xbf16, #tpu.memory_space<vmem>>, %arg2: memref<128x128xbf16, #tpu.memory_space<vmem>>, %arg3: memref<1x128xf32, #tpu.memory_space<vmem>>, %arg4: memref<1x128xf32, #tpu.memory_space<vmem>>, %arg5: memref<1x128xf32, #tpu.memory_space<vmem>>, %arg6: memref<128x512xbf16, #tpu.memory_space<vmem>>, %arg7: memref<1x512xf32, #tpu.memory_space<vmem>>, %arg8: memref<512x128xbf16, #tpu.memory_space<vmem>>, %arg9: memref<1x128xf32, #tpu.memory_space<vmem>>, %arg10: memref<32x256xf32, #tpu.memory_space<any>>, %arg11: memref<32x128xf32, #tpu.memory_space<vmem>>) attributes {dimension_semantics = [#tpu.dimension_semantics<parallel>], iteration_bounds = array<i64: 1>, scalar_prefetch = 0 : i64, scratch_operands = 0 : i64, tpu.core_type = #tpu.core_type<tc>, window_params = [{transform_indices = @transform_0, window_bounds = array<i64: 32, 128>}, {pipeline_mode = #tpu.pipeline_mode<synchronous>, transform_indices = @transform_1, window_bounds = array<i64: 128, 128>}, {pipeline_mode = #tpu.pipeline_mode<synchronous>, transform_indices = @transform_2, window_bounds = array<i64: 1, 128>}, {pipeline_mode = #tpu.pipeline_mode<synchronous>, transform_indices = @transform_3, window_bounds = array<i64: 1, 128>}, {pipeline_mode = #tpu.pipeline_mode<synchronous>, transform_indices = @transform_4, window_bounds = array<i64: 1, 128>}, {pipeline_mode = #tpu.pipeline_mode<synchronous>, transform_indices = @transform_5, window_bounds = array<i64: 128, 512>}, {pipeline_mode = #tpu.pipeline_mode<synchronous>, transform_indices = @transform_6, window_bounds = array<i64: 1, 512>}, {pipeline_mode = #tpu.pipeline_mode<synchronous>, transform_indices = @transform_7, window_bounds = array<i64: 512, 128>}, {pipeline_mode = #tpu.pipeline_mode<synchronous>, transform_indices = @transform_8, window_bounds = array<i64: 1, 128>}, {}, {transform_indices = @transform_10, window_bounds = array<i64: 32, 128>}]} {
    %c0 = arith.constant 0 : index
    %c0_0 = arith.constant 0 : index
    %0 = vector.load %arg1[%c0, %c0_0] : memref<32x128xbf16, #tpu.memory_space<vmem>>, vector<32x128xbf16>
    %c0_1 = arith.constant 0 : index
    %c0_2 = arith.constant 0 : index
    %1 = vector.load %arg2[%c0_1, %c0_2] : memref<128x128xbf16, #tpu.memory_space<vmem>>, vector<128x128xbf16>
    %cst = arith.constant dense<0.000000e+00> : vector<32x128xf32>
    %2 = tpu.matmul %0, %1, %cst {dimension_numbers = #tpu.dot_dimension_numbers<[1], [0], [0], [1], [0, 0, 1, 1], [], []>} : vector<32x128xbf16>, vector<128x128xbf16>, vector<32x128xf32> -> vector<32x128xf32>
    %c0_3 = arith.constant 0 : index
    %c0_4 = arith.constant 0 : index
    %3 = vector.load %arg3[%c0_3, %c0_4] : memref<1x128xf32, #tpu.memory_space<vmem>>, vector<1x128xf32>
    %4 = vector.broadcast %3 : vector<1x128xf32> to vector<32x128xf32>
    %5 = arith.addf %2, %4 : vector<32x128xf32>
    %cst_5 = arith.constant dense<0.000000e+00> : vector<32xf32>
    %6 = vector.multi_reduction <add>, %5, %cst_5 [1] : vector<32x128xf32> to vector<32xf32>
    %7 = vector.shape_cast %6 : vector<32xf32> to vector<32x1xf32>
    %cst_6 = arith.constant 1.280000e+02 : f32
    %8 = vector.broadcast %cst_6 : f32 to vector<32x1xf32>
    %9 = arith.divf %7, %8 : vector<32x1xf32>
    %10 = vector.broadcast %9 : vector<32x1xf32> to vector<32x128xf32>
    %11 = arith.subf %5, %10 : vector<32x128xf32>
    %12 = vector.broadcast %9 : vector<32x1xf32> to vector<32x128xf32>
    %13 = arith.subf %5, %12 : vector<32x128xf32>
    %14 = arith.mulf %11, %13 : vector<32x128xf32>
    %cst_7 = arith.constant dense<0.000000e+00> : vector<32xf32>
    %15 = vector.multi_reduction <add>, %14, %cst_7 [1] : vector<32x128xf32> to vector<32xf32>
    %16 = vector.shape_cast %15 : vector<32xf32> to vector<32x1xf32>
    %cst_8 = arith.constant 1.280000e+02 : f32
    %17 = vector.broadcast %cst_8 : f32 to vector<32x1xf32>
    %18 = arith.divf %16, %17 : vector<32x1xf32>
    %19 = vector.broadcast %9 : vector<32x1xf32> to vector<32x128xf32>
    %20 = arith.subf %5, %19 : vector<32x128xf32>
    %cst_9 = arith.constant 9.99999974E-6 : f32
    %21 = vector.broadcast %cst_9 : f32 to vector<32x1xf32>
    %22 = arith.addf %18, %21 : vector<32x1xf32>
    %23 = math.rsqrt %22 : vector<32x1xf32>
    %24 = vector.broadcast %23 : vector<32x1xf32> to vector<32x128xf32>
    %25 = arith.mulf %20, %24 : vector<32x128xf32>
    %c0_10 = arith.constant 0 : index
    %c0_11 = arith.constant 0 : index
    %26 = vector.load %arg4[%c0_10, %c0_11] : memref<1x128xf32, #tpu.memory_space<vmem>>, vector<1x128xf32>
    %27 = vector.broadcast %26 : vector<1x128xf32> to vector<32x128xf32>
    %28 = arith.mulf %25, %27 : vector<32x128xf32>
    %c0_12 = arith.constant 0 : index
    %c0_13 = arith.constant 0 : index
    %29 = vector.load %arg5[%c0_12, %c0_13] : memref<1x128xf32, #tpu.memory_space<vmem>>, vector<1x128xf32>
    %30 = vector.broadcast %29 : vector<1x128xf32> to vector<32x128xf32>
    %31 = arith.addf %28, %30 : vector<32x128xf32>
    %32 = arith.truncf %31 : vector<32x128xf32> to vector<32x128xbf16>
    %c0_14 = arith.constant 0 : index
    %c0_15 = arith.constant 0 : index
    %33 = vector.load %arg6[%c0_14, %c0_15] : memref<128x512xbf16, #tpu.memory_space<vmem>>, vector<128x512xbf16>
    %cst_16 = arith.constant dense<0.000000e+00> : vector<32x512xf32>
    %34 = tpu.matmul %32, %33, %cst_16 {dimension_numbers = #tpu.dot_dimension_numbers<[1], [0], [0], [1], [0, 0, 1, 1], [], []>} : vector<32x128xbf16>, vector<128x512xbf16>, vector<32x512xf32> -> vector<32x512xf32>
    %c0_17 = arith.constant 0 : index
    %c0_18 = arith.constant 0 : index
    %35 = vector.load %arg7[%c0_17, %c0_18] : memref<1x512xf32, #tpu.memory_space<vmem>>, vector<1x512xf32>
    %36 = vector.broadcast %35 : vector<1x512xf32> to vector<32x512xf32>
    %37 = arith.addf %34, %36 : vector<32x512xf32>
    %cst_19 = arith.constant 1.702000e+00 : f32
    %38 = vector.broadcast %cst_19 : f32 to vector<32x512xf32>
    %39 = arith.mulf %38, %37 : vector<32x512xf32>
    %40 = arith.negf %39 : vector<32x512xf32>
    %41 = math.exp %40 : vector<32x512xf32>
    %cst_20 = arith.constant 1.000000e+00 : f32
    %42 = vector.broadcast %cst_20 : f32 to vector<32x512xf32>
    %43 = arith.addf %42, %41 : vector<32x512xf32>
    %44 = arith.divf %42, %43 : vector<32x512xf32>
    %45 = arith.mulf %37, %44 : vector<32x512xf32>
    %46 = arith.truncf %45 : vector<32x512xf32> to vector<32x512xbf16>
    %c0_21 = arith.constant 0 : index
    %c0_22 = arith.constant 0 : index
    %47 = vector.load %arg8[%c0_21, %c0_22] : memref<512x128xbf16, #tpu.memory_space<vmem>>, vector<512x128xbf16>
    %cst_23 = arith.constant dense<0.000000e+00> : vector<32x128xf32>
    %48 = tpu.matmul %46, %47, %cst_23 {dimension_numbers = #tpu.dot_dimension_numbers<[1], [0], [0], [1], [0, 0, 1, 1], [], []>} : vector<32x512xbf16>, vector<512x128xbf16>, vector<32x128xf32> -> vector<32x128xf32>
    %c0_24 = arith.constant 0 : index
    %c0_25 = arith.constant 0 : index
    %49 = vector.load %arg9[%c0_24, %c0_25] : memref<1x128xf32, #tpu.memory_space<vmem>>, vector<1x128xf32>
    %50 = vector.broadcast %49 : vector<1x128xf32> to vector<32x128xf32>
    %51 = arith.addf %48, %50 : vector<32x128xf32>
    %52 = arith.addf %5, %51 : vector<32x128xf32>
    %c0_26 = arith.constant 0 : index
    %c0_27 = arith.constant 0 : index
    %53 = vector.load %arg11[%c0_26, %c0_27] : memref<32x128xf32, #tpu.memory_space<vmem>>, vector<32x128xf32>
    tpu.vector_store %arg11[%c0_26, %c0_27], %52 {strides = array<i32>} : memref<32x128xf32, #tpu.memory_space<vmem>>, vector<32x128xf32>,
    return
  }
  func.func @transform_0(%arg0: i32) -> (i32, i32) {
    %c0_i32 = arith.constant 0 : i32
    %c0_i32_0 = arith.constant 0 : i32
    return %arg0, %c0_i32 : i32, i32
  }
  func.func @transform_1(%arg0: i32) -> (i32, i32) {
    %c0_i32 = arith.constant 0 : i32
    %c0_i32_0 = arith.constant 0 : i32
    %c0_i32_1 = arith.constant 0 : i32
    return %c0_i32, %c0_i32_0 : i32, i32
  }
  func.func @transform_2(%arg0: i32) -> (i32, i32) {
    %c0_i32 = arith.constant 0 : i32
    %c0_i32_0 = arith.constant 0 : i32
    %c0_i32_1 = arith.constant 0 : i32
    return %c0_i32, %c0_i32_0 : i32, i32
  }
  func.func @transform_3(%arg0: i32) -> (i32, i32) {
    %c0_i32 = arith.constant 0 : i32
    %c0_i32_0 = arith.constant 0 : i32
    %c0_i32_1 = arith.constant 0 : i32
    return %c0_i32, %c0_i32_0 : i32, i32
  }
  func.func @transform_4(%arg0: i32) -> (i32, i32) {
    %c0_i32 = arith.constant 0 : i32
    %c0_i32_0 = arith.constant 0 : i32
    %c0_i32_1 = arith.constant 0 : i32
    return %c0_i32, %c0_i32_0 : i32, i32
  }
  func.func @transform_5(%arg0: i32) -> (i32, i32) {
    %c0_i32 = arith.constant 0 : i32
    %c0_i32_0 = arith.constant 0 : i32
    %c0_i32_1 = arith.constant 0 : i32
    return %c0_i32, %c0_i32_0 : i32, i32
  }
  func.func @transform_6(%arg0: i32) -> (i32, i32) {
    %c0_i32 = arith.constant 0 : i32
    %c0_i32_0 = arith.constant 0 : i32
    %c0_i32_1 = arith.constant 0 : i32
    return %c0_i32, %c0_i32_0 : i32, i32
  }
  func.func @transform_7(%arg0: i32) -> (i32, i32) {
    %c0_i32 = arith.constant 0 : i32
    %c0_i32_0 = arith.constant 0 : i32
    %c0_i32_1 = arith.constant 0 : i32
    return %c0_i32, %c0_i32_0 : i32, i32
  }
  func.func @transform_8(%arg0: i32) -> (i32, i32) {
    %c0_i32 = arith.constant 0 : i32
    %c0_i32_0 = arith.constant 0 : i32
    %c0_i32_1 = arith.constant 0 : i32
    return %c0_i32, %c0_i32_0 : i32, i32
  }
  func.func @transform_10(%arg0: i32) -> (i32, i32) {
    %c1_i32 = arith.constant 1 : i32
    %c0_i32 = arith.constant 0 : i32
    return %arg0, %c1_i32 : i32, i32
  }
}

</mosaic_0001>

<bundles_post_ra>
// kernel: mix_vision_tower_forward.2
= control target key start
LH: loop header
LB: loop body
LE: loop exit
PB: predicated region body
PF: predicated region fallthrough
CT: control target
= control target key end

     0   :  { %v1641_v45 = vmov 128.0   ;;  %s2329_s0 = inlined_call_operand.vmem [shape: bf16[32,256], index: 0, kind: input, shape index: {}]   ;;  %s2330_s1 = inlined_call_operand.vmem [shape: bf16[256,128], index: 1, kind: input, shape index: {}]   ;;  %s2331_s2 = inlined_call_operand.vmem [shape: f32[1,128], index: 2, kind: input, shape index: {}]   ;;  %s2332_s3 = inlined_call_operand.vmem [shape: f32[1,128], index: 3, kind: input, shape index: {}]   ;;  %s2333_s4 = inlined_call_operand.vmem [shape: f32[1,128], index: 4, kind: input, shape index: {}]   ;;  %s2334_s5 = inlined_call_operand.vmem [shape: bf16[128,512], index: 5, kind: input, shape index: {}]   ;;  %s2335_s6 = inlined_call_operand.vmem [shape: f32[1,512], index: 6, kind: input, shape index: {}]   ;;  %s2336_s7 = inlined_call_operand.vmem [shape: bf16[512,128], index: 7, kind: input, shape index: {}]   ;;  %s2337_s8 = inlined_call_operand.vmem [shape: f32[1,128], index: 8, kind: input, shape index: {}]   ;;  %s2338_s9 = inlined_call_operand.vmem [shape: f32[32,256], index: 9, kind: output, shape index: {}]  }
   0x1   :  { %v1505_v0 = vld [vmem:[%s2330_s1 + $0x38] sm:$0xff]  ;;  %v1504_v2 = vld [vmem:[%s2330_s1 + $0x30] sm:$0xff]  ;;  %v1503_v4 = vld [vmem:[%s2330_s1 + $0x28] sm:$0xff]  ;;  %1599 = vrcp.f32 %v1641_v45 }
   0x2   :  { %v1513_v1 = vld [vmem:[%s2330_s1 + $0x78] sm:$0xff]  ;;  %188 = vmatpush.bf16.msra.mxu0 %v1505_v0  ;;  %v1512_v3 = vld [vmem:[%s2330_s1 + $0x70] sm:$0xff]  ;;  %v1511_v5 = vld [vmem:[%s2330_s1 + $0x68] sm:$0xff] }
   0x3   :  { %207 = vmatpush.bf16.msra.mxu1 %v1513_v1  ;;  %v1502_v6 = vld [vmem:[%s2330_s1 + $0x20] sm:$0xff]  ;;  %v1501_v8 = vld [vmem:[%s2330_s1 + $0x18] sm:$0xff]  ;;  %v1500_v10 = vld [vmem:[%s2330_s1 + $0x10] sm:$0xff] }
   0x4   :  { %v1510_v7 = vld [vmem:[%s2330_s1 + $0x60] sm:$0xff]  ;;  %v1509_v9 = vld [vmem:[%s2330_s1 + $0x58] sm:$0xff]  ;;  %v1508_v11 = vld [vmem:[%s2330_s1 + $0x50] sm:$0xff] }
   0x5   :  { %v1499_v12 = vld [vmem:[%s2330_s1 + $0x8] sm:$0xff]  ;;  %v1498_v14 = vld [vmem:[%s2330_s1] sm:$0xff]  ;;  %v1168_v22 = vld [vmem:[%s2329_s0 + $0x10] sm:$0xf] }
   0x6   :  { %189 = vmatpush.bf16.msra.mxu0 %v1504_v2  ;;  %v1507_v13 = vld [vmem:[%s2330_s1 + $0x48] sm:$0xff]  ;;  %v1506_v15 = vld [vmem:[%s2330_s1 + $0x40] sm:$0xff]  ;;  %v1497_v23 = vld [vmem:[%s2329_s0 + $0x14] sm:$0xf0] }
   0x7   :  { %208 = vmatpush.bf16.msra.mxu1 %v1512_v3  ;;  %v1160_v16 = vld [vmem:[%s2329_s0] sm:$0xf]  ;;  %v1495_v17 = vld [vmem:[%s2329_s0 + $0x4] sm:$0xf0]  ;;  %v1494_v18 = vld [vmem:[%s2329_s0 + $0x4] sm:$0xf]  ;;  %v1169_v26 = vor.u32 %v1497_v23, %v1168_v22  ;;  %v1600_v46 = vpop.eup %1599 }
   0x8   :  { %v1162_v19 = vld [vmem:[%s2329_s0 + $0x8] sm:$0xf0]  ;;  %v1161_v20 = vor.u32 %v1495_v17, %v1160_v16  ;;  %v1496_v24 = vld [vmem:[%s2329_s0 + $0x14] sm:$0xf]  ;;  %v1170_v25 = vld [vmem:[%s2329_s0 + $0x18] sm:$0xf0]  ;;  %vm239_vm0 = vweird.f32 %v1600_v46 }
   0x9   :  { %v1165_v21 = vor.u32 %v1494_v18, %v1162_v19  ;;  %v1173_v27 = vor.u32 %v1496_v24, %v1170_v25  ;;  %v1595_v28 = vld [vmem:[%s2331_s2] ss:$0 sm:$0xff]  ;;  %v235_v47 = vmul.f32 128.0, %v1600_v46  ;;  %v1540_v17 = vld [vmem:[%s2334_s5 + $0xcc] sm:$0xf0] }
   0xa   :  { %190 = vmatpush.bf16.msra.mxu0 %v1503_v4  ;;  %v1352_v4 = vld [vmem:[%s2334_s5 + $0xe0] sm:$0xf]  ;;  %v1538_v18 = vld [vmem:[%s2334_s5 + $0xc4] sm:$0xf]  ;;  %v1541_v22 = vld [vmem:[%s2334_s5 + $0xd4] sm:$0xf0] }
   0xb   :  { %209 = vmatpush.bf16.msra.mxu1 %v1511_v5  ;;  %v236_v48 = vsub.f32 1.0, %v235_v47  ;;  %v1544_v5 = vld [vmem:[%s2334_s5 + $0xec] sm:$0xf0]  ;;  %v1336_v16 = vld [vmem:[%s2334_s5 + $0xc0] sm:$0xf] }
   0xc   :  { %v1337_v19 = vor.u32 %v1540_v17, %v1336_v16  ;;  %v1539_v25 = vld [vmem:[%s2334_s5 + $0xcc] sm:$0xf]  ;;  %v1532_v45 = vld [vmem:[%s2334_s5 + $0x8c] sm:$0xf0] }
   0xd   :  { %v237_v49 = vmul.f32 %v1600_v46, %v236_v48  ;;  %v1306_v48 = vld [vmem:[%s2334_s5 + $0x90] sm:$0xf0] }
   0xe   :  { %191 = vmatpush.bf16.msra.mxu0 %v1502_v6  ;;  %v1542_v6 = vld [vmem:[%s2334_s5 + $0xe4] sm:$0xf] }
   0xf   :  { %210 = vmatpush.bf16.msra.mxu1 %v1510_v7  ;;  %v238_v50 = vadd.f32 %v1600_v46, %v237_v49  ;;  %v1353_v7 = vor.u32 %v1544_v5, %v1352_v4  ;;  %v1312_v49 = vld [vmem:[%s2334_s5 + $0x88] sm:$0xf] }
  0x11   :  { %v1779_v51 = vsel %vm239_vm0, %v1600_v46, %v238_v50  ;;  %533 = vmatpush.bf16.msra.mxu2 %v1353_v7  ;;  %v1530_v46 = vld [vmem:[%s2334_s5 + $0x84] sm:$0xf]  ;;  %v1533_v50 = vld [vmem:[%s2334_s5 + $0x94] sm:$0xf0]  ;;  %v1298_v7 = vld [vmem:[%s2334_s5 + $0x78] sm:$0xf0] }
  0x12   :  { %192 = vmatpush.bf16.msra.mxu0 %v1501_v8  ;;  %v1354_v8 = vld [vmem:[%s2334_s5 + $0xf0] sm:$0xf0] }
  0x13   :  { %211 = vmatpush.bf16.msra.mxu1 %v1509_v9  ;;  %v1360_v9 = vld [vmem:[%s2334_s5 + $0xe8] sm:$0xf] }
  0x15   :  { %534 = vmatpush.bf16.msra.mxu2 %v1337_v19  ;;  %v1282_v19 = vld [vmem:[%s2334_s5 + $0x58] sm:$0xf0] }
  0x16   :  { %193 = vmatpush.bf16.msra.mxu0 %v1500_v10  ;;  %v1545_v10 = vld [vmem:[%s2334_s5 + $0xf4] sm:$0xf0] }
  0x17   :  { %212 = vmatpush.bf16.msra.mxu1 %v1508_v11  ;;  %v1357_v11 = vor.u32 %v1542_v6, %v1354_v8  ;;  %v1527_v6 = vld [vmem:[%s2334_s5 + $0x6c] sm:$0xf] }
  0x18   :  { %v1301_v8 = vor.u32 %v1527_v6, %v1298_v7 }
  0x19   :  { %552 = vmatpush.bf16.msra.mxu3 %v1357_v11  ;;  %v1522_v11 = vld [vmem:[%s2334_s5 + $0x44] sm:$0xf] }
  0x1a   :  { %194 = vmatpush.bf16.msra.mxu0 %v1499_v12  ;;  %v1361_v12 = vor.u32 %v1545_v10, %v1360_v9  ;;  %v1272_v9 = vld [vmem:[%s2334_s5 + $0x40] sm:$0xf]  ;;  %v1524_v10 = vld [vmem:[%s2334_s5 + $0x4c] sm:$0xf0] }
  0x1b   :  { %213 = vmatpush.bf16.msra.mxu1 %v1507_v13  ;;  %v1543_v13 = vld [vmem:[%s2334_s5 + $0xec] sm:$0xf] }
  0x1e   :  { %195 = vmatpush.bf16.msra.mxu0 %v1498_v14  ;;  %v1362_v14 = vld [vmem:[%s2334_s5 + $0xf8] sm:$0xf0] }
  0x1f   :  { %214 = vmatpush.bf16.msra.mxu1 %v1506_v15  ;;  %v1365_v15 = vor.u32 %v1543_v13, %v1362_v14  ;;  %v1274_v13 = vld [vmem:[%s2334_s5 + $0x50] sm:$0xf0]  ;;  %v1280_v14 = vld [vmem:[%s2334_s5 + $0x48] sm:$0xf] }
  0x20   :  { %v1277_v16 = vor.u32 %v1522_v11, %v1274_v13 }
  0x21   :  { %196 = vmatmul.bf16.vlgmr.msra.gmra.mxu0 %v1161_v20  ;;  %v1338_v20 = vld [vmem:[%s2334_s5 + $0xd0] sm:$0xf0] }
  0x22   :  { %215 = vmatmul.bf16.vlgmr.msra.gmra.mxu1 %v1165_v21  ;;  %571 = vmatpush.bf16.msrb.mxu0 %v1361_v12  ;;  %v1344_v21 = vld [vmem:[%s2334_s5 + $0xc8] sm:$0xf]  ;;  %v1341_v23 = vor.u32 %v1538_v18, %v1338_v20  ;;  %v1273_v12 = vor.u32 %v1524_v10, %v1272_v9  ;;  %v1523_v18 = vld [vmem:[%s2334_s5 + $0x4c] sm:$0xf] }
  0x23   :  { %590 = vmatpush.bf16.msrb.mxu1 %v1365_v15  ;;  %v1345_v24 = vor.u32 %v1541_v22, %v1344_v21  ;;  %v1525_v15 = vld [vmem:[%s2334_s5 + $0x54] sm:$0xf0]  ;;  %v1285_v20 = vor.u32 %v1523_v18, %v1282_v19  ;;  %v1256_v21 = vld [vmem:[%s2334_s5 + $0x20] sm:$0xf]  ;;  %v1520_v22 = vld [vmem:[%s2334_s5 + $0x2c] sm:$0xf0] }
  0x24   :  { %553 = vmatpush.bf16.msra.mxu3 %v1341_v23  ;;  %v1281_v17 = vor.u32 %v1525_v15, %v1280_v14  ;;  %v1518_v23 = vld [vmem:[%s2334_s5 + $0x24] sm:$0xf] }
  0x26   :  { %572 = vmatpush.bf16.msrb.mxu0 %v1345_v24  ;;  %v1257_v24 = vor.u32 %v1520_v22, %v1256_v21  ;;  %v1597_v22 = vld [vmem:[%s2333_s4] ss:$0 sm:$0xff] }
  0x31   :  { %201 = vmatmul.bf16.gmra.mxu0 %v1169_v26  ;;  %v1346_v26 = vld [vmem:[%s2334_s5 + $0xd8] sm:$0xf0] }
  0x32   :  { %220 = vmatmul.bf16.gmra.mxu1 %v1173_v27  ;;  %v1349_v27 = vor.u32 %v1539_v25, %v1346_v26  ;;  %v1258_v25 = vld [vmem:[%s2334_s5 + $0x30] sm:$0xf0]  ;;  %v1264_v26 = vld [vmem:[%s2334_s5 + $0x28] sm:$0xf] }
  0x34   :  { %591 = vmatpush.bf16.msrb.mxu1 %v1349_v27  ;;  %v1521_v27 = vld [vmem:[%s2334_s5 + $0x34] sm:$0xf0] }
  0x9e   :  { %v197_v29 = vpop.f32.mrf.mxu0 }
  0x9f   :  { %v216_v30 = vpop.f32.mrf.mxu1  ;;  %v198_v31 = vadd.f32 %v1595_v28, %v197_v29  ;;  %v1536_v29 = vld [vmem:[%s2334_s5 + $0xac] sm:$0xf0] }
  0xa1   :  { %v1767_v32 = vadd.f32 %v216_v30, %v198_v31  ;;  %v1534_v30 = vld [vmem:[%s2334_s5 + $0xa4] sm:$0xf] }
  0xa3   :  { %226 = vadd.xlane.f32.xlu0 %v1767_v32 }
  0xa6   :  { %v199_v33 = vpop.f32.mrf.mxu0 }
  0xa7   :  { %v218_v34 = vpop.f32.mrf.mxu1  ;;  %v200_v35 = vadd.f32 %v1595_v28, %v199_v33  ;;  %v1322_v33 = vld [vmem:[%s2334_s5 + $0xb0] sm:$0xf0] }
  0xa9   :  { %v1770_v36 = vadd.f32 %v218_v34, %v200_v35  ;;  %v1328_v34 = vld [vmem:[%s2334_s5 + $0xa8] sm:$0xf]  ;;  %v1537_v35 = vld [vmem:[%s2334_s5 + $0xb4] sm:$0xf0] }
  0xab   :  { %228 = vadd.xlane.f32.xlu0 %v1770_v36 }
  0xae   :  { %v202_v37 = vpop.f32.mrf.mxu0 }
  0xaf   :  { %v221_v38 = vpop.f32.mrf.mxu1  ;;  %v203_v39 = vadd.f32 %v1595_v28, %v202_v37  ;;  %v1325_v37 = vor.u32 %v1534_v30, %v1322_v33  ;;  %v1519_v30 = vld [vmem:[%s2334_s5 + $0x2c] sm:$0xf] }
  0xb1   :  { %v1773_v40 = vadd.f32 %v221_v38, %v203_v39  ;;  %v1329_v38 = vor.u32 %v1537_v35, %v1328_v34  ;;  %v1535_v39 = vld [vmem:[%s2334_s5 + $0xac] sm:$0xf]  ;;  %554 = vmatpush.bf16.msra.mxu3 %v1325_v37  ;;  %v1240_v37 = vld [vmem:[%s2334_s5] sm:$0xf] }
  0xb3   :  { %230 = vadd.xlane.f32.xlu1 %v1773_v40  ;;  %573 = vmatpush.bf16.msrb.mxu0 %v1329_v38  ;;  %v1516_v38 = vld [vmem:[%s2334_s5 + $0xc] sm:$0xf0] }
  0xb6   :  { %v204_v41 = vpop.f32.mrf.mxu0 }
  0xb7   :  { %v205_v42 = vadd.f32 %v1595_v28, %v204_v41  ;;  %v223_v43 = vpop.f32.mrf.mxu1  ;;  %v1320_v28 = vld [vmem:[%s2334_s5 + $0xa0] sm:$0xf]  ;;  %v1330_v41 = vld [vmem:[%s2334_s5 + $0xb8] sm:$0xf0] }
  0xb8   :  { %v1321_v31 = vor.u32 %v1536_v29, %v1320_v28  ;;  %v1261_v28 = vor.u32 %v1518_v23, %v1258_v25  ;;  %v1265_v29 = vor.u32 %v1521_v27, %v1264_v26 }
  0xb9   :  { %v1776_v44 = vadd.f32 %v223_v43, %v205_v42  ;;  %v1333_v42 = vor.u32 %v1535_v39, %v1330_v41  ;;  %v1304_v43 = vld [vmem:[%s2334_s5 + $0x80] sm:$0xf]  ;;  %v1514_v39 = vld [vmem:[%s2334_s5 + $0x4] sm:$0xf]  ;;  %v1241_v41 = vor.u32 %v1516_v38, %v1240_v37 }
  0xba   :  { %535 = vmatpush.bf16.msra.mxu2 %v1321_v31  ;;  %v1305_v47 = vor.u32 %v1532_v45, %v1304_v43  ;;  %v1266_v31 = vld [vmem:[%s2334_s5 + $0x38] sm:$0xf0]  ;;  %v1248_v43 = vld [vmem:[%s2334_s5 + $0x8] sm:$0xf]  ;;  %v1517_v45 = vld [vmem:[%s2334_s5 + $0x14] sm:$0xf0] }
  0xbb   :  { %232 = vadd.xlane.f32.xlu1 %v1776_v44  ;;  %592 = vmatpush.bf16.msrb.mxu1 %v1333_v42  ;;  %v1269_v34 = vor.u32 %v1519_v30, %v1266_v31  ;;  %v1242_v42 = vld [vmem:[%s2334_s5 + $0x10] sm:$0xf0] }
  0xbe   :  { %536 = vmatpush.bf16.msra.mxu2 %v1305_v47  ;;  %v1245_v47 = vor.u32 %v1514_v39, %v1242_v42 }
 0x116   :  { %v227_v52 = vpop.xlane.xlu0 %226 }
 0x117   :  { %v241_v53 = vmul.f32 %v1779_v51, %v227_v52  ;;  %v1309_v52 = vor.u32 %v1530_v46, %v1306_v48  ;;  %v1249_v48 = vor.u32 %v1517_v45, %v1248_v43 }
 0x119   :  { %v1783_v54 = vsub.f32 %v1767_v32, %v241_v53  ;;  %v1313_v53 = vor.u32 %v1533_v50, %v1312_v49  ;;  %555 = vmatpush.bf16.msra.mxu3 %v1309_v52  ;;  %v1515_v49 = vld [vmem:[%s2334_s5 + $0xc] sm:$0xf]  ;;  %v1250_v50 = vld [vmem:[%s2334_s5 + $0x18] sm:$0xf0] }
 0x11a   :  { %v1253_v52 = vor.u32 %v1515_v49, %v1250_v50  ;;  %v1553_v49 = vld [vmem:[%s2336_s7 + $0x38] sm:$0xff] }
 0x11b   :  { %v249_v55 = vmul.f32 %v1783_v54, %v1783_v54  ;;  %574 = vmatpush.bf16.msrb.mxu0 %v1313_v53  ;;  %v1561_v50 = vld [vmem:[%s2336_s7 + $0x78] sm:$0xff] }
 0x11d   :  { %253 = vadd.xlane.f32.xlu2 %v249_v55  ;;  %v1531_v55 = vld [vmem:[%s2334_s5 + $0x8c] sm:$0xf] }
 0x11e   :  { %v229_v56 = vpop.xlane.xlu0 %228 }
 0x11f   :  { %v242_v57 = vmul.f32 %v1779_v51, %v229_v56  ;;  %v1314_v56 = vld [vmem:[%s2334_s5 + $0x98] sm:$0xf0] }
 0x121   :  { %v1789_v58 = vsub.f32 %v1770_v36, %v242_v57  ;;  %v1317_v57 = vor.u32 %v1531_v55, %v1314_v56 }
 0x123   :  { %v250_v59 = vmul.f32 %v1789_v58, %v1789_v58  ;;  %593 = vmatpush.bf16.msrb.mxu1 %v1317_v57 }
 0x125   :  { %255 = vadd.xlane.f32.xlu2 %v250_v59  ;;  %v1288_v59 = vld [vmem:[%s2334_s5 + $0x60] sm:$0xf] }
 0x126   :  { %v231_v60 = vpop.xlane.xlu1 %230 }
 0x127   :  { %v243_v61 = vmul.f32 %v1779_v51, %v231_v60  ;;  %v1528_v60 = vld [vmem:[%s2334_s5 + $0x6c] sm:$0xf0]  ;;  %594 = vmatpush.bf16.msrb.mxu1 %v1301_v8 }
 0x129   :  { %v1795_v62 = vsub.f32 %v1773_v40, %v243_v61  ;;  %v1526_v61 = vld [vmem:[%s2334_s5 + $0x64] sm:$0xf] }
 0x12b   :  { %v251_v63 = vmul.f32 %v1795_v62, %v1795_v62  ;;  %595 = vmatpush.bf16.msrb.mxu1 %v1285_v20 }
 0x12d   :  { %257 = vadd.xlane.f32.xlu0 %v251_v63  ;;  %v1289_v63 = vor.u32 %v1528_v60, %v1288_v59 }
 0x12e   :  { %v233_v0 = vpop.xlane.xlu1 %232 }
 0x12f   :  { %v244_v1 = vmul.f32 %v1779_v51, %v233_v0  ;;  %v1290_v0 = vld [vmem:[%s2334_s5 + $0x70] sm:$0xf0]  ;;  %537 = vmatpush.bf16.msra.mxu2 %v1289_v63  ;;  %596 = vmatpush.bf16.msrb.mxu1 %v1269_v34 }
 0x130   :  { %v1293_v4 = vor.u32 %v1526_v61, %v1290_v0 }
 0x131   :  { %v1801_v2 = vsub.f32 %v1776_v44, %v244_v1  ;;  %v1296_v1 = vld [vmem:[%s2334_s5 + $0x68] sm:$0xf] }
 0x132   :  { %556 = vmatpush.bf16.msra.mxu3 %v1293_v4 }
 0x133   :  { %v252_v3 = vmul.f32 %v1801_v2, %v1801_v2  ;;  %538 = vmatpush.bf16.msra.mxu2 %v1273_v12  ;;  %597 = vmatpush.bf16.msrb.mxu1 %v1253_v52  ;;  %v2044_v52 = vld [vmem:[%s2336_s7 + $0xa8] sm:$0xff] }
 0x135   :  { %259 = vadd.xlane.f32.xlu1 %v252_v3  ;;  %v1529_v3 = vld [vmem:[%s2334_s5 + $0x74] sm:$0xf0] }
 0x136   :  { %v1297_v5 = vor.u32 %v1529_v3, %v1296_v1  ;;  %557 = vmatpush.bf16.msra.mxu3 %v1277_v16  ;;  %v1596_v16 = vld [vmem:[%s2332_s3] ss:$0 sm:$0xff] }
 0x137   :  { %539 = vmatpush.bf16.msra.mxu2 %v1257_v24 }
 0x138   :  { %575 = vmatpush.bf16.msrb.mxu0 %v1297_v5 }
 0x13a   :  { %558 = vmatpush.bf16.msra.mxu3 %v1261_v28 }
 0x13b   :  { %540 = vmatpush.bf16.msra.mxu2 %v1241_v41 }
 0x13c   :  { %576 = vmatpush.bf16.msrb.mxu0 %v1281_v17 }
 0x13e   :  { %559 = vmatpush.bf16.msra.mxu3 %v1245_v47  ;;  %v2014_v47 = vld [vmem:[%s2336_s7 + $0xb8] sm:$0xff] }
 0x13f   :  { %1021 = vmatpush.bf16.msrb.mxu2 %v1553_v49 }
 0x140   :  { %577 = vmatpush.bf16.msrb.mxu0 %v1265_v29 }
 0x142   :  { %1040 = vmatpush.bf16.msrb.mxu3 %v1561_v50 }
 0x144   :  { %578 = vmatpush.bf16.msrb.mxu0 %v1249_v48  ;;  %v2031_v48 = vld [vmem:[%s2336_s7 + $0xf0] sm:$0xff] }
 0x148   :  { %1059 = vmatpush.bf16.msra.mxu0 %v2014_v47 }
 0x190   :  { %v254_v33 = vpop.xlane.xlu2 %253 }
 0x191   :  { %v261_v35 = vmul.f32 %v254_v33, %v1779_v51 }
 0x193   :  { %v265_v46 = vadd.f32 1e-06, %v261_v35 }
 0x195   :  { %1601 = vrsqrt.f32 %v265_v46  ;;  %vm275_vm2 = vweird.f32 %v265_v46 }
 0x198   :  { %v256_v53 = vpop.xlane.xlu2 %255 }
 0x199   :  { %v262_v55 = vmul.f32 %v256_v53, %v1779_v51  ;;  %v2049_v53 = vld [vmem:[%s2336_s7 + $0xe8] sm:$0xff] }
 0x19b   :  { %v1602_v56 = vpop.eup %1601  ;;  %v266_v57 = vadd.f32 1e-06, %v262_v55  ;;  %v1552_v55 = vld [vmem:[%s2336_s7 + $0x30] sm:$0xff] }
 0x19c   :  { %v270_v59 = vmul.f32 %v1602_v56, %v265_v46  ;;  %vm276_vm1 = vweird.f32 %v1602_v56  ;;  %1022 = vmatpush.bf16.msrb.mxu2 %v1552_v55 }
 0x19d   :  { %1603 = vrsqrt.f32 %v266_v57  ;;  %vm277_vm3 = vmor %vm275_vm2, %vm276_vm1  ;;  %vm285_vm5 = vweird.f32 %v266_v57 }
 0x19e   :  { %v271_v60 = vmul.f32 %v1602_v56, %v270_v59  ;;  %v2067_v59 = vld [vmem:[%s2336_s7 + $0xe0] sm:$0xff] }
 0x1a0   :  { %v272_v61 = vmul.f32 0.5, %v271_v60  ;;  %v258_v63 = vpop.xlane.xlu0 %257  ;;  %v1551_v60 = vld [vmem:[%s2336_s7 + $0x28] sm:$0xff] }
 0x1a1   :  { %v263_v0 = vmul.f32 %v258_v63, %v1779_v51  ;;  %1023 = vmatpush.bf16.msrb.mxu2 %v1551_v60  ;;  %v2080_v63 = vld [vmem:[%s2336_s7 + $0x98] sm:$0xff] }
 0x1a2   :  { %v273_v1 = vsub.f32 1.5, %v272_v61  ;;  %v1559_v61 = vld [vmem:[%s2336_s7 + $0x68] sm:$0xff] }
 0x1a3   :  { %v1604_v3 = vpop.eup %1603  ;;  %v267_v4 = vadd.f32 1e-06, %v263_v0  ;;  %v2085_v0 = vld [vmem:[%s2336_s7 + $0xd8] sm:$0xff] }
 0x1a4   :  { %v274_v5 = vmul.f32 %v1602_v56, %v273_v1  ;;  %v280_v6 = vmul.f32 %v1604_v3, %v266_v57  ;;  %vm286_vm4 = vweird.f32 %v1604_v3  ;;  %v2062_v57 = vld [vmem:[%s2336_s7 + $0xa0] sm:$0xff] }
 0x1a5   :  { %1605 = vrsqrt.f32 %v267_v4  ;;  %vm287_vm6 = vmor %vm285_vm5, %vm286_vm4  ;;  %vm295_vm8 = vweird.f32 %v267_v4  ;;  %v1550_v1 = vld [vmem:[%s2336_s7 + $0x20] sm:$0xff] }
 0x1a6   :  { %v281_v7 = vmul.f32 %v1604_v3, %v280_v6  ;;  %v278_v8 = vsel %vm277_vm3, %v1602_v56, %v274_v5  ;;  %v1560_v56 = vld [vmem:[%s2336_s7 + $0x70] sm:$0xff]  ;;  %1024 = vmatpush.bf16.msrb.mxu2 %v1550_v1  ;;  %v363_v6 = vld [vmem:[%s2335_s6] sm:$0xf] }
 0x1a7   :  { %v309_v14 = vmul.f32 %v278_v8, %v1783_v54  ;;  %1041 = vmatpush.bf16.msrb.mxu3 %v1560_v56  ;;  %v2103_v5 = vld [vmem:[%s2336_s7 + $0xd0] sm:$0xff]  ;;  %v1557_v8 = vld [vmem:[%s2336_s7 + $0x58] sm:$0xff] }
 0x1a8   :  { %v282_v9 = vmul.f32 0.5, %v281_v7  ;;  %v260_v10 = vpop.xlane.xlu1 %259  ;;  %v1549_v7 = vld [vmem:[%s2336_s7 + $0x18] sm:$0xff] }
 0x1a9   :  { %v264_v11 = vmul.f32 %v260_v10, %v1779_v51  ;;  %v317_v51 = vmul.f32 %v1596_v16, %v309_v14  ;;  %v2118_v10 = vperm.slane %v363_v6, 3  ;;  %v1556_v14 = vld [vmem:[%s2336_s7 + $0x50] sm:$0xff] }
 0x1aa   :  { %v283_v12 = vsub.f32 1.5, %v282_v9  ;;  %v2116_v9 = vperm.slane %v363_v6, 2  ;;  %1025 = vmatpush.bf16.msrb.mxu2 %v1549_v7 }
 0x1ab   :  { %v1606_v13 = vpop.eup %1605  ;;  %v268_v15 = vadd.f32 1e-06, %v264_v11  ;;  %v325_v26 = vadd.f32 %v1597_v22, %v317_v51  ;;  %1042 = vmatpush.bf16.msrb.mxu3 %v1559_v61  ;;  %v2123_v11 = vld [vmem:[%s2336_s7 + $0x88] sm:$0xff]  ;;  %v2156_v51 = vperm.slane %v363_v6, 1 }
 0x1ac   :  { %v284_v17 = vmul.f32 %v1604_v3, %v283_v12  ;;  %v290_v18 = vmul.f32 %v1606_v13, %v267_v4  ;;  %vm296_vm7 = vweird.f32 %v1606_v13  ;;  %v2098_v4 = vld [vmem:[%s2336_s7 + $0x90] sm:$0xff]  ;;  %v2128_v12 = vld [vmem:[%s2336_s7 + $0xc8] sm:$0xff] }
 0x1ad   :  { %1607 = vrsqrt.f32 %v268_v15  ;;  %vm297_vm9 = vmor %vm295_vm8, %vm296_vm7  ;;  %vm305_vm11 = vweird.f32 %v268_v15 }
 0x1ae   :  { %v288_v19 = vsel %vm287_vm6, %v1604_v3, %v284_v17  ;;  %v291_v20 = vmul.f32 %v1606_v13, %v290_v18  ;;  %v1558_v3 = vld [vmem:[%s2336_s7 + $0x60] sm:$0xff] }
 0x1af   :  { %v310_v21 = vmul.f32 %v288_v19, %v1789_v58  ;;  %1043 = vmatpush.bf16.msrb.mxu3 %v1558_v3  ;;  %v2147_v19 = vld [vmem:[%s2336_s7 + $0x80] sm:$0xff] }
 0x1b0   :  { %v292_v54 = vmul.f32 0.5, %v291_v20  ;;  %v2152_v20 = vld [vmem:[%s2336_s7 + $0xc0] sm:$0xff] }
 0x1b1   :  { %v318_v23 = vmul.f32 %v1596_v16, %v310_v21  ;;  %v2154_v21 = vperm.slane %v363_v6, 0 }
 0x1b2   :  { %v293_v24 = vsub.f32 1.5, %v292_v54 }
 0x1b3   :  { %v1608_v25 = vpop.eup %1607  ;;  %v326_v27 = vadd.f32 %v1597_v22, %v318_v23  ;;  %1044 = vmatpush.bf16.msrb.mxu3 %v1557_v8  ;;  %v1547_v23 = vld [vmem:[%s2336_s7 + $0x8] sm:$0xff] }
 0x1b4   :  { %v294_v28 = vmul.f32 %v1606_v13, %v293_v24  ;;  %v300_v29 = vmul.f32 %v1608_v25, %v268_v15  ;;  %vm306_vm10 = vweird.f32 %v1608_v25  ;;  %v1555_v24 = vld [vmem:[%s2336_s7 + $0x48] sm:$0xff] }
 0x1b5   :  { %v329_v30 = vpack.c.bf16 %v326_v27, %v325_v26  ;;  %vm307_vm12 = vmor %vm305_vm11, %vm306_vm10 }
 0x1b6   :  { %v301_v31 = vmul.f32 %v1608_v25, %v300_v29  ;;  %v298_v58 = vsel %vm297_vm9, %v1606_v13, %v294_v28  ;;  %v1548_v13 = vld [vmem:[%s2336_s7 + $0x10] sm:$0xff] }
 0x1b7   :  { %541 = vmatmul.bf16.vlgmr.msra.gmra.mxu2 %v329_v30  ;;  %560 = vmatmul.bf16.vlgmr.msra.gmra.mxu3 %v329_v30  ;;  %v311_v35 = vmul.f32 %v298_v58, %v1795_v62  ;;  %v2019_v62 = vld [vmem:[%s2336_s7 + $0xf8] sm:$0xff] }
 0x1b8   :  { %v302_v33 = vmul.f32 0.5, %v301_v31  ;;  %579 = vmatmul.bf16.vlgmr.msrb.gmra.mxu0 %v329_v30  ;;  %598 = vmatmul.bf16.vlgmr.msrb.gmra.mxu1 %v329_v30 }
 0x1b9   :  { %v319_v41 = vmul.f32 %v1596_v16, %v311_v35  ;;  %1078 = vmatpush.bf16.msra.mxu1 %v2019_v62  ;;  %1026 = vmatpush.bf16.msrb.mxu2 %v1548_v13 }
 0x1ba   :  { %v303_v34 = vsub.f32 1.5, %v302_v33  ;;  %1045 = vmatpush.bf16.msrb.mxu3 %v1556_v14  ;;  %v1546_v33 = vld [vmem:[%s2336_s7] sm:$0xff] }
 0x1bb   :  { %v327_v43 = vadd.f32 %v1597_v22, %v319_v41 }
 0x1bc   :  { %v304_v37 = vmul.f32 %v1608_v25, %v303_v34  ;;  %v1554_v34 = vld [vmem:[%s2336_s7 + $0x40] sm:$0xff] }
 0x1bd   :  { %1079 = vmatpush.bf16.msra.mxu1 %v2031_v48  ;;  %1027 = vmatpush.bf16.msrb.mxu2 %v1547_v23 }
 0x1be   :  { %v308_v38 = vsel %vm307_vm12, %v1608_v25, %v304_v37  ;;  %1046 = vmatpush.bf16.msrb.mxu3 %v1555_v24 }
 0x1bf   :  { %v312_v39 = vmul.f32 %v308_v38, %v1801_v2  ;;  %v2026_v2 = vld [vmem:[%s2336_s7 + $0xb0] sm:$0xff] }
 0x1c0   :  { %1060 = vmatpush.bf16.msra.mxu0 %v2026_v2 }
 0x1c1   :  { %v320_v42 = vmul.f32 %v1596_v16, %v312_v39  ;;  %1080 = vmatpush.bf16.msra.mxu1 %v2049_v53  ;;  %1028 = vmatpush.bf16.msrb.mxu2 %v1546_v33 }
 0x1c2   :  { %1047 = vmatpush.bf16.msrb.mxu3 %v1554_v34 }
 0x1c3   :  { %v328_v45 = vadd.f32 %v1597_v22, %v320_v42 }
 0x1c4   :  { %1061 = vmatpush.bf16.msra.mxu0 %v2044_v52 }
 0x1c5   :  { %v330_v46 = vpack.c.bf16 %v328_v45, %v327_v43  ;;  %1081 = vmatpush.bf16.msra.mxu1 %v2067_v59  ;;  %1578 = vmatpush.bf16.msra.mxu2 %v2014_v47 }
 0x1c6   :  { %1586 = vmatpush.bf16.msra.mxu3 %v2019_v62 }
 0x1c7   :  { %546 = vmatmul.bf16.gmra.mxu2 %v330_v46  ;;  %565 = vmatmul.bf16.gmra.mxu3 %v330_v46 }
 0x1c8   :  { %584 = vmatmul.bf16.gmra.mxu0 %v330_v46  ;;  %603 = vmatmul.bf16.gmra.mxu1 %v330_v46 }
 0x1c9   :  { %1062 = vmatpush.bf16.msra.mxu0 %v2062_v57  ;;  %1082 = vmatpush.bf16.msra.mxu1 %v2085_v0 }
 0x1ca   :  { %1579 = vmatpush.bf16.msra.mxu2 %v2026_v2  ;;  %1587 = vmatpush.bf16.msra.mxu3 %v2031_v48 }
 0x1cd   :  { %1063 = vmatpush.bf16.msra.mxu0 %v2080_v63  ;;  %1083 = vmatpush.bf16.msra.mxu1 %v2103_v5 }
 0x1ce   :  { %1580 = vmatpush.bf16.msra.mxu2 %v2044_v52  ;;  %1588 = vmatpush.bf16.msra.mxu3 %v2049_v53 }
 0x1d1   :  { %1064 = vmatpush.bf16.msra.mxu0 %v2098_v4  ;;  %1084 = vmatpush.bf16.msra.mxu1 %v2128_v12 }
 0x1d2   :  { %1581 = vmatpush.bf16.msra.mxu2 %v2062_v57  ;;  %1589 = vmatpush.bf16.msra.mxu3 %v2067_v59 }
 0x1d5   :  { %1065 = vmatpush.bf16.msra.mxu0 %v2123_v11  ;;  %1085 = vmatpush.bf16.msra.mxu1 %v2152_v20 }
 0x1d6   :  { %1582 = vmatpush.bf16.msra.mxu2 %v2080_v63  ;;  %1590 = vmatpush.bf16.msra.mxu3 %v2085_v0 }
 0x1d9   :  { %1066 = vmatpush.bf16.msra.mxu0 %v2147_v19 }
 0x1da   :  { %1583 = vmatpush.bf16.msra.mxu2 %v2098_v4  ;;  %1591 = vmatpush.bf16.msra.mxu3 %v2103_v5 }
 0x1de   :  { %1584 = vmatpush.bf16.msra.mxu2 %v2123_v11  ;;  %1592 = vmatpush.bf16.msra.mxu3 %v2128_v12 }
 0x1e2   :  { %1585 = vmatpush.bf16.msra.mxu2 %v2147_v19  ;;  %1593 = vmatpush.bf16.msra.mxu3 %v2152_v20 }
 0x235   :  { %v580_v15 = vpop.f32.mrf.mxu0  ;;  %v599_v16 = vpop.f32.mrf.mxu1 }
 0x236   :  { %v2139_v17 = vadd.f32 %v580_v15, %v2116_v9  ;;  %v2142_v18 = vadd.f32 %v599_v16, %v2118_v10 }
 0x238   :  { %v611_v22 = vmul.f32 %v2139_v17, %v2139_v17  ;;  %v612_v54 = vmul.f32 %v2142_v18, %v2142_v18 }
 0x23a   :  { %v627_v25 = vmul.f32 %v611_v22, %v2139_v17  ;;  %v628_v26 = vmul.f32 %v612_v54, %v2142_v18  ;;  %v542_v27 = vpop.f32.mrf.mxu2  ;;  %v561_v28 = vpop.f32.mrf.mxu3 }
 0x23b   :  { %v2173_v29 = vadd.f32 %v542_v27, %v2154_v21  ;;  %v2176_v30 = vadd.f32 %v561_v28, %v2156_v51 }
 0x23c   :  { %v643_v31 = vmul.f32 0.044715, %v627_v25  ;;  %v644_v58 = vmul.f32 0.044715, %v628_v26 }
 0x23d   :  { %v609_v35 = vmul.f32 %v2173_v29, %v2173_v29  ;;  %v610_v37 = vmul.f32 %v2176_v30, %v2176_v30  ;;  %v582_v38 = vpop.f32.mrf.mxu0  ;;  %v601_v39 = vpop.f32.mrf.mxu1 }
 0x23e   :  { %v659_v41 = vadd.f32 %v643_v31, %v2139_v17  ;;  %v660_v42 = vadd.f32 %v644_v58, %v2142_v18  ;;  %v2191_v43 = vadd.f32 %v582_v38, %v2116_v9  ;;  %v2194_v45 = vadd.f32 %v601_v39, %v2118_v10 }
 0x23f   :  { %v625_v46 = vmul.f32 %v609_v35, %v2173_v29  ;;  %v626_v49 = vmul.f32 %v610_v37, %v2176_v30 }
 0x240   :  { %v675_v50 = vmul.f32 0.7978846, %v659_v41  ;;  %v676_v55 = vmul.f32 0.7978846, %v660_v42  ;;  %v615_v56 = vmul.f32 %v2191_v43, %v2191_v43  ;;  %v616_v60 = vmul.f32 %v2194_v45, %v2194_v45 }
 0x241   :  { %v641_v61 = vmul.f32 0.044715, %v625_v46  ;;  %v642_v8 = vmul.f32 0.044715, %v626_v49 }
 0x242   :  { %v631_v1 = vmul.f32 %v615_v56, %v2191_v43  ;;  %v632_v3 = vmul.f32 %v616_v60, %v2194_v45  ;;  %v544_v6 = vpop.f32.mrf.mxu2  ;;  %v563_v7 = vpop.f32.mrf.mxu3  ;;  %1609 = vtanh.f32 %v675_v50 }
 0x243   :  { %v2207_v47 = vadd.f32 %v544_v6, %v2154_v21  ;;  %1611 = vtanh.f32 %v676_v55  ;;  %v2211_v15 = vadd.f32 %v563_v7, %v2156_v51  ;;  %v657_v62 = vadd.f32 %v641_v61, %v2173_v29 }
 0x244   :  { %v647_v13 = vmul.f32 0.044715, %v631_v1  ;;  %v648_v14 = vmul.f32 0.044715, %v632_v3  ;;  %v658_v48 = vadd.f32 %v642_v8, %v2176_v30 }
 0x245   :  { %v613_v16 = vmul.f32 %v2207_v47, %v2207_v47  ;;  %v585_v22 = vpop.f32.mrf.mxu0  ;;  %v614_v2 = vmul.f32 %v2211_v15, %v2211_v15  ;;  %v604_v25 = vpop.f32.mrf.mxu1  ;;  %v673_v58 = vmul.f32 0.7978846, %v657_v62 }
 0x246   :  { %v663_v54 = vadd.f32 %v647_v13, %v2191_v43  ;;  %v664_v23 = vadd.f32 %v648_v14, %v2194_v45  ;;  %v674_v41 = vmul.f32 0.7978846, %v658_v48  ;;  %v2242_v59 = vadd.f32 %v585_v22, %v2116_v9 }
 0x247   :  { %v629_v24 = vmul.f32 %v613_v16, %v2207_v47  ;;  %v630_v28 = vmul.f32 %v614_v2, %v2211_v15 }
 0x248   :  { %v679_v26 = vmul.f32 0.7978846, %v663_v54  ;;  %v680_v27 = vmul.f32 0.7978846, %v664_v23  ;;  %v1610_v31 = vpop.eup %1609  ;;  %v2250_v23 = vadd.f32 %v604_v25, %v2118_v10 }
 0x249   :  { %v645_v33 = vmul.f32 0.044715, %v629_v24  ;;  %v1612_v34 = vpop.eup %1611  ;;  %v646_v35 = vmul.f32 0.044715, %v630_v28  ;;  %v707_v52 = vadd.f32 1.0, %v1610_v31  ;;  %v619_v24 = vmul.f32 %v2242_v59, %v2242_v59 }
 0x24a   :  { %1613 = vtanh.f32 %v679_v26  ;;  %v547_v37 = vpop.f32.mrf.mxu2  ;;  %v566_v38 = vpop.f32.mrf.mxu3  ;;  %v708_v53 = vadd.f32 1.0, %v1612_v34 }
 0x24b   :  { %1615 = vtanh.f32 %v680_v27  ;;  %v661_v39 = vadd.f32 %v645_v33, %v2207_v47  ;;  %v662_v42 = vadd.f32 %v646_v35, %v2211_v15  ;;  %v2230_v46 = vadd.f32 %v547_v37, %v2154_v21 }
 0x24c   :  { %1617 = vtanh.f32 %v673_v58  ;;  %v2234_v50 = vadd.f32 %v566_v38, %v2156_v51  ;;  %v723_v1 = vmul.f32 0.5, %v707_v52  ;;  %v724_v6 = vmul.f32 0.5, %v708_v53 }
 0x24d   :  { %v677_v49 = vmul.f32 0.7978846, %v661_v39  ;;  %v617_v55 = vmul.f32 %v2230_v46, %v2230_v46  ;;  %v587_v56 = vpop.f32.mrf.mxu0  ;;  %v678_v57 = vmul.f32 0.7978846, %v662_v42  ;;  %v606_v13 = vpop.f32.mrf.mxu1  ;;  %v635_v11 = vmul.f32 %v619_v24, %v2242_v59 }
 0x24e   :  { %v618_v60 = vmul.f32 %v2234_v50, %v2234_v50  ;;  %v2246_v8 = vadd.f32 %v587_v56, %v2116_v9  ;;  %v739_v2 = vmul.f32 %v723_v1, %v2139_v17  ;;  %v2258_v48 = vadd.f32 %v606_v13, %v2118_v10 }
 0x24f   :  { %1619 = vtanh.f32 %v677_v49  ;;  %v633_v62 = vmul.f32 %v617_v55, %v2230_v46  ;;  %v740_v25 = vmul.f32 %v724_v6, %v2142_v18  ;;  %v620_v42 = vmul.f32 %v2250_v23, %v2250_v23 }
 0x250   :  { %v1614_v61 = vpop.eup %1613  ;;  %1621 = vtanh.f32 %v674_v41  ;;  %v634_v22 = vmul.f32 %v618_v60, %v2234_v50  ;;  %v623_v28 = vmul.f32 %v2246_v8, %v2246_v8 }
 0x251   :  { %v1616_v3 = vpop.eup %1615  ;;  %v711_v7 = vadd.f32 1.0, %v1614_v61  ;;  %1623 = vtanh.f32 %v678_v57  ;;  %v649_v58 = vmul.f32 0.044715, %v633_v62 }
 0x252   :  { %v712_v14 = vadd.f32 1.0, %v1616_v3  ;;  %v549_v16 = vpop.f32.mrf.mxu2  ;;  %v1618_v63 = vpop.eup %1617  ;;  %v650_v5 = vmul.f32 0.044715, %v634_v22  ;;  %v639_v38 = vmul.f32 %v623_v28, %v2246_v8 }
 0x253   :  { %v727_v54 = vmul.f32 0.5, %v711_v7  ;;  %v568_v0 = vpop.f32.mrf.mxu3  ;;  %v2266_v4 = vadd.f32 %v549_v16, %v2154_v21  ;;  %v705_v33 = vadd.f32 1.0, %v1618_v63  ;;  %v624_v21 = vmul.f32 %v2258_v48, %v2258_v48 }
 0x254   :  { %v728_v9 = vmul.f32 0.5, %v712_v14  ;;  %v2270_v10 = vadd.f32 %v568_v0, %v2156_v51  ;;  %v665_v53 = vadd.f32 %v649_v58, %v2230_v46  ;;  %v666_v12 = vadd.f32 %v650_v5, %v2234_v50 }
 0x255   :  { %v1620_v26 = vpop.eup %1619  ;;  %v743_v27 = vmul.f32 %v727_v54, %v2191_v43  ;;  %v621_v18 = vmul.f32 %v2266_v4, %v2266_v4  ;;  %v721_v37 = vmul.f32 0.5, %v705_v33  ;;  %v640_v60 = vmul.f32 %v624_v21, %v2258_v48 }
 0x256   :  { %v1622_v17 = vpop.eup %1621  ;;  %v744_v31 = vmul.f32 %v728_v9, %v2194_v45  ;;  %v709_v43 = vadd.f32 1.0, %v1620_v26  ;;  %v622_v35 = vmul.f32 %v2270_v10, %v2270_v10  ;;  %v655_v3 = vmul.f32 0.044715, %v639_v38 }
 0x257   :  { %v755_v34 = vpack.c.bf16 %v743_v27, %v739_v2  ;;  %v1624_v51 = vpop.eup %1623  ;;  %v637_v39 = vmul.f32 %v621_v18, %v2266_v4  ;;  %v706_v41 = vadd.f32 1.0, %v1622_v17  ;;  %v737_v56 = vmul.f32 %v721_v37, %v2173_v29 }
 0x258   :  { %v756_v45 = vpack.c.bf16 %v744_v31, %v740_v25  ;;  %v725_v52 = vmul.f32 0.5, %v709_v43  ;;  %v638_v49 = vmul.f32 %v622_v35, %v2270_v10  ;;  %v710_v1 = vadd.f32 1.0, %v1624_v51 }
 0x259   :  { %1067 = vmatmul.bf16.vlgmr.msra.gmra.mxu0 %v755_v34  ;;  %v653_v55 = vmul.f32 0.044715, %v637_v39  ;;  %v722_v13 = vmul.f32 0.5, %v706_v41  ;;  %v681_v16 = vmul.f32 0.7978846, %v665_v53  ;;  %v671_v0 = vadd.f32 %v655_v3, %v2246_v8 }
 0x25a   :  { %1086 = vmatmul.bf16.vlgmr.msra.gmra.mxu1 %v756_v45  ;;  %v741_v57 = vmul.f32 %v725_v52, %v2207_v47  ;;  %v654_v61 = vmul.f32 0.044715, %v638_v49  ;;  %v726_v62 = vmul.f32 0.5, %v710_v1  ;;  %v651_v29 = vmul.f32 0.044715, %v635_v11 }
 0x25b   :  { %v669_v6 = vadd.f32 %v653_v55, %v2266_v4  ;;  %v636_v47 = vmul.f32 %v620_v42, %v2250_v23  ;;  %v682_v63 = vmul.f32 0.7978846, %v666_v12  ;;  %v738_v54 = vmul.f32 %v722_v13, %v2176_v30 }
 0x25c   :  { %v753_v7 = vpack.c.bf16 %v741_v57, %v737_v56  ;;  %v670_v14 = vadd.f32 %v654_v61, %v2270_v10  ;;  %v742_v22 = vmul.f32 %v726_v62, %v2211_v15  ;;  %1625 = vtanh.f32 %v681_v16  ;;  %v1598_v62 = vld [vmem:[%s2337_s8] ss:$0 sm:$0xff] }
 0x25d   :  { %v685_v19 = vmul.f32 0.7978846, %v669_v6  ;;  %v656_v2 = vmul.f32 0.044715, %v640_v60  ;;  %v667_v24 = vadd.f32 %v651_v29, %v2242_v59  ;;  %v652_v26 = vmul.f32 0.044715, %v636_v47 }
 0x25e   :  { %1029 = vmatmul.bf16.vlgmr.msrb.gmra.mxu2 %v753_v7  ;;  %v686_v20 = vmul.f32 0.7978846, %v670_v14  ;;  %v754_v9 = vpack.c.bf16 %v742_v22, %v738_v54  ;;  %v687_v25 = vmul.f32 0.7978846, %v671_v0 }
 0x25f   :  { %1627 = vtanh.f32 %v685_v19  ;;  %v672_v27 = vadd.f32 %v656_v2, %v2258_v48  ;;  %v683_v17 = vmul.f32 0.7978846, %v667_v24  ;;  %v668_v15 = vadd.f32 %v652_v26, %v2250_v23 }
 0x260   :  { %1629 = vtanh.f32 %v682_v63  ;;  %1048 = vmatmul.bf16.vlgmr.msrb.gmra.mxu3 %v754_v9 }
 0x261   :  { %1631 = vtanh.f32 %v686_v20  ;;  %v688_v18 = vmul.f32 0.7978846, %v672_v27  ;;  %v684_v45 = vmul.f32 0.7978846, %v668_v15 }
 0x262   :  { %v1626_v28 = vpop.eup %1625  ;;  %1633 = vtanh.f32 %v687_v25 }
 0x263   :  { %v713_v31 = vadd.f32 1.0, %v1626_v28  ;;  %1635 = vtanh.f32 %v683_v17 }
 0x264   :  { %1637 = vtanh.f32 %v688_v18 }
 0x265   :  { %v1628_v30 = vpop.eup %1627  ;;  %v729_v34 = vmul.f32 0.5, %v713_v31  ;;  %1639 = vtanh.f32 %v684_v45 }
 0x266   :  { %v1630_v58 = vpop.eup %1629  ;;  %v717_v33 = vadd.f32 1.0, %v1628_v30 }
 0x267   :  { %v1632_v5 = vpop.eup %1631  ;;  %v714_v43 = vadd.f32 1.0, %v1630_v58  ;;  %v745_v51 = vmul.f32 %v729_v34, %v2230_v46 }
 0x268   :  { %v733_v21 = vmul.f32 0.5, %v717_v33  ;;  %v718_v35 = vadd.f32 1.0, %v1632_v5  ;;  %v1634_v42 = vpop.eup %1633 }
 0x269   :  { %v730_v37 = vmul.f32 0.5, %v714_v43  ;;  %v1636_v49 = vpop.eup %1635  ;;  %v719_v12 = vadd.f32 1.0, %v1634_v42 }
 0x26a   :  { %v749_v38 = vmul.f32 %v733_v21, %v2266_v4  ;;  %v734_v39 = vmul.f32 0.5, %v718_v35  ;;  %v1638_v55 = vpop.eup %1637  ;;  %v715_v56 = vadd.f32 1.0, %v1636_v49 }
 0x26b   :  { %v746_v41 = vmul.f32 %v730_v37, %v2234_v50  ;;  %v1640_v57 = vpop.eup %1639  ;;  %v735_v46 = vmul.f32 0.5, %v719_v12  ;;  %v720_v60 = vadd.f32 1.0, %v1638_v55 }
 0x26c   :  { %v757_v52 = vpack.c.bf16 %v749_v38, %v745_v51  ;;  %v750_v11 = vmul.f32 %v734_v39, %v2270_v10  ;;  %v731_v4 = vmul.f32 0.5, %v715_v56  ;;  %v716_v61 = vadd.f32 1.0, %v1640_v57 }
 0x26d   :  { %v751_v1 = vmul.f32 %v735_v46, %v2246_v8  ;;  %v736_v3 = vmul.f32 0.5, %v720_v60 }
 0x26e   :  { %1034 = vmatmul.bf16.gmra.mxu2 %v757_v52  ;;  %v758_v53 = vpack.c.bf16 %v750_v11, %v746_v41  ;;  %v747_v50 = vmul.f32 %v731_v4, %v2242_v59  ;;  %v732_v10 = vmul.f32 0.5, %v716_v61 }
 0x26f   :  { %v752_v6 = vmul.f32 %v736_v3, %v2258_v48 }
 0x270   :  { %1053 = vmatmul.bf16.gmra.mxu3 %v758_v53  ;;  %v759_v7 = vpack.c.bf16 %v751_v1, %v747_v50  ;;  %v748_v13 = vmul.f32 %v732_v10, %v2250_v23 }
 0x272   :  { %v760_v14 = vpack.c.bf16 %v752_v6, %v748_v13 }
 0x27e   :  { %1072 = vmatmul.bf16.vlgmr.msra.gmra.mxu2 %v759_v7 }
 0x280   :  { %1091 = vmatmul.bf16.vlgmr.msra.gmra.mxu3 %v760_v14 }
 0x2d6   :  { %v1068_v47 = vpop.f32.mrf.mxu0 }
 0x2d7   :  { %v1087_v63 = vpop.f32.mrf.mxu1 }
 0x2de   :  { %v1070_v2 = vpop.f32.mrf.mxu0 }
 0x2df   :  { %v1089_v24 = vpop.f32.mrf.mxu1 }
 0x2e1   :  { %v1030_v16 = vpop.f32.mrf.mxu2 }
 0x2e2   :  { %v1031_v29 = vadd.f32 %v1598_v62, %v1030_v16 }
 0x2e3   :  { %v1049_v8 = vpop.f32.mrf.mxu3 }
 0x2e4   :  { %v1050_v19 = vadd.f32 %v1049_v8, %v1031_v29 }
 0x2e6   :  { %v1069_v59 = vadd.f32 %v1068_v47, %v1050_v19 }
 0x2e8   :  { %v1088_v22 = vadd.f32 %v1087_v63, %v1069_v59 }
 0x2e9   :  { %v1032_v54 = vpop.f32.mrf.mxu2 }
 0x2ea   :  { %v1033_v48 = vadd.f32 %v1598_v62, %v1032_v54  ;;  %v1097_v20 = vadd.f32 %v1088_v22, %v1767_v32 }
 0x2eb   :  { %v1051_v23 = vpop.f32.mrf.mxu3 }
 0x2ec   :  { %1142 = vst [vmem:[%s2338_s9] sm:$0xff] %v1097_v20  ;;  %v1052_v0 = vadd.f32 %v1051_v23, %v1033_v48 }
 0x2ee   :  { %v1071_v9 = vadd.f32 %v1070_v2, %v1052_v0 }
 0x2f0   :  { %v1090_v25 = vadd.f32 %v1089_v24, %v1071_v9 }
 0x2f1   :  { %v1035_v26 = vpop.f32.mrf.mxu2 }
 0x2f2   :  { %v1098_v27 = vadd.f32 %v1090_v25, %v1770_v36  ;;  %v1036_v32 = vadd.f32 %v1598_v62, %v1035_v26 }
 0x2f3   :  { %v1054_v28 = vpop.f32.mrf.mxu3 }
 0x2f4   :  { %1144 = vst [vmem:[%s2338_s9 + $0x10] sm:$0xff] %v1098_v27  ;;  %v1055_v15 = vadd.f32 %v1054_v28, %v1036_v32 }
 0x2f9   :  { %v1037_v30 = vpop.f32.mrf.mxu2 }
 0x2fa   :  { %v1038_v33 = vadd.f32 %v1598_v62, %v1037_v30 }
 0x2fb   :  { %v1056_v17 = vpop.f32.mrf.mxu3 }
 0x2fc   :  { %v1057_v34 = vadd.f32 %v1056_v17, %v1038_v33 }
 0x301   :  { %v1073_v31 = vpop.f32.mrf.mxu2 }
 0x302   :  { %v1074_v58 = vadd.f32 %v1073_v31, %v1055_v15 }
 0x303   :  { %v1092_v5 = vpop.f32.mrf.mxu3 }
 0x304   :  { %v1093_v18 = vadd.f32 %v1092_v5, %v1074_v58 }
 0x306   :  { %v1099_v43 = vadd.f32 %v1093_v18, %v1773_v40 }
 0x308   :  { %1146 = vst [vmem:[%s2338_s9 + $0x20] sm:$0xff] %v1099_v43 }
 0x309   :  { %v1075_v21 = vpop.f32.mrf.mxu2 }
 0x30a   :  { %v1076_v36 = vadd.f32 %v1075_v21, %v1057_v34 }
 0x30b   :  { %v1094_v35 = vpop.f32.mrf.mxu3 }
 0x30c   :  { %v1095_v45 = vadd.f32 %v1094_v35, %v1076_v36 }
 0x30e   :  { %v1100_v37 = vadd.f32 %v1095_v45, %v1776_v44 }
 0x310   :  { %1148 = vst [vmem:[%s2338_s9 + $0x30] sm:$0xff] %v1100_v37 }

// kernel: mix_vision_tower_forward.3
= control target key start
LH: loop header
LB: loop body
LE: loop exit
PB: predicated region body
PF: predicated region fallthrough
CT: control target
= control target key end

     0   :  { %v1738_v19 = vmov 128.0   ;;  %s2700_s0 = inlined_call_operand.vmem [shape: bf16[32,128], index: 0, kind: input, shape index: {}]   ;;  %s2701_s1 = inlined_call_operand.vmem [shape: bf16[128,128], index: 1, kind: input, shape index: {}]   ;;  %s2702_s2 = inlined_call_operand.vmem [shape: f32[1,128], index: 2, kind: input, shape index: {}]   ;;  %s2703_s3 = inlined_call_operand.vmem [shape: f32[1,128], index: 3, kind: input, shape index: {}]   ;;  %s2704_s4 = inlined_call_operand.vmem [shape: f32[1,128], index: 4, kind: input, shape index: {}]   ;;  %s2705_s5 = inlined_call_operand.vmem [shape: bf16[128,512], index: 5, kind: input, shape index: {}]   ;;  %s2706_s6 = inlined_call_operand.vmem [shape: f32[1,512], index: 6, kind: input, shape index: {}]   ;;  %s2707_s7 = inlined_call_operand.vmem [shape: bf16[512,128], index: 7, kind: input, shape index: {}]   ;;  %s2708_s8 = inlined_call_operand.vmem [shape: f32[1,128], index: 8, kind: input, shape index: {}]   ;;  %s2709_s9 = inlined_call_operand.vmem [shape: f32[32,256], index: 9, kind: input, shape index: {}, may-alias: {9,10}]   ;;  %s2710_s10 = inlined_call_operand.vmem [shape: f32[32,256], index: 10, kind: output, shape index: {}, may-alias: {9,10}]  }
   0x1   :  { %v1586_v0 = vld [vmem:[%s2701_s1 + $0x38] sm:$0xff]  ;;  %v1585_v1 = vld [vmem:[%s2701_s1 + $0x30] sm:$0xff]  ;;  %v1584_v2 = vld [vmem:[%s2701_s1 + $0x28] sm:$0xff]  ;;  %1664 = vrcp.f32 %v1738_v19 }
   0x2   :  { %117 = vmatpush.bf16.msra.mxu0 %v1586_v0  ;;  %v1583_v3 = vld [vmem:[%s2701_s1 + $0x20] sm:$0xff]  ;;  %v1582_v4 = vld [vmem:[%s2701_s1 + $0x18] sm:$0xff]  ;;  %v1581_v5 = vld [vmem:[%s2701_s1 + $0x10] sm:$0xff] }
   0x3   :  { %v1580_v6 = vld [vmem:[%s2701_s1 + $0x8] sm:$0xff]  ;;  %v1579_v7 = vld [vmem:[%s2701_s1] sm:$0xff]  ;;  %v1617_v43 = vld [vmem:[%s2705_s5 + $0xec] sm:$0xf0] }
   0x4   :  { %v1577_v8 = vld [vmem:[%s2700_s0] sm:$0xff]  ;;  %v1578_v9 = vld [vmem:[%s2700_s0 + $0x8] sm:$0xff]  ;;  %v1417_v46 = vld [vmem:[%s2705_s5 + $0xf0] sm:$0xf0] }
   0x5   :  { %v1660_v10 = vld [vmem:[%s2702_s2] ss:$0 sm:$0xff]  ;;  %v1615_v44 = vld [vmem:[%s2705_s5 + $0xe4] sm:$0xf]  ;;  %v1423_v47 = vld [vmem:[%s2705_s5 + $0xe8] sm:$0xf] }
   0x6   :  { %118 = vmatpush.bf16.msra.mxu0 %v1585_v1  ;;  %v1415_v42 = vld [vmem:[%s2705_s5 + $0xe0] sm:$0xf]  ;;  %v1618_v48 = vld [vmem:[%s2705_s5 + $0xf4] sm:$0xf0]  ;;  %v1420_v49 = vor.u32 %v1615_v44, %v1417_v46  ;;  %v1616_v51 = vld [vmem:[%s2705_s5 + $0xec] sm:$0xf] }
   0x7   :  { %v1665_v20 = vpop.eup %1664  ;;  %v1416_v45 = vor.u32 %v1617_v43, %v1415_v42  ;;  %v1424_v50 = vor.u32 %v1618_v48, %v1423_v47  ;;  %v1425_v52 = vld [vmem:[%s2705_s5 + $0xf8] sm:$0xf0]  ;;  %v1399_v54 = vld [vmem:[%s2705_s5 + $0xc0] sm:$0xf]  ;;  %v1613_v55 = vld [vmem:[%s2705_s5 + $0xcc] sm:$0xf0] }
   0x8   :  { %v145_v21 = vmul.f32 128.0, %v1665_v20  ;;  %vm149_vm0 = vweird.f32 %v1665_v20  ;;  %v1428_v53 = vor.u32 %v1616_v51, %v1425_v52  ;;  %462 = vmatpush.bf16.msra.mxu2 %v1420_v49  ;;  %v1611_v56 = vld [vmem:[%s2705_s5 + $0xc4] sm:$0xf]  ;;  %v1400_v57 = vor.u32 %v1613_v55, %v1399_v54  ;;  %v1401_v58 = vld [vmem:[%s2705_s5 + $0xd0] sm:$0xf0] }
   0x9   :  { %443 = vmatpush.bf16.msra.mxu1 %v1416_v45  ;;  %481 = vmatpush.bf16.msra.mxu3 %v1424_v50  ;;  %v1407_v59 = vld [vmem:[%s2705_s5 + $0xc8] sm:$0xf]  ;;  %v1614_v60 = vld [vmem:[%s2705_s5 + $0xd4] sm:$0xf0]  ;;  %v1404_v61 = vor.u32 %v1611_v56, %v1401_v58  ;;  %v1612_v63 = vld [vmem:[%s2705_s5 + $0xcc] sm:$0xf] }
   0xa   :  { %119 = vmatpush.bf16.msra.mxu0 %v1584_v2  ;;  %v146_v22 = vsub.f32 1.0, %v145_v21  ;;  %v1408_v62 = vor.u32 %v1614_v60, %v1407_v59  ;;  %v1409_v0 = vld [vmem:[%s2705_s5 + $0xd8] sm:$0xf0]  ;;  %v1383_v2 = vld [vmem:[%s2705_s5 + $0xa0] sm:$0xf] }
   0xb   :  { %v1412_v1 = vor.u32 %v1612_v63, %v1409_v0  ;;  %v1605_v19 = vld [vmem:[%s2705_s5 + $0x8c] sm:$0xf0]  ;;  %v1600_v44 = vld [vmem:[%s2705_s5 + $0x6c] sm:$0xf]  ;;  %v1361_v45 = vld [vmem:[%s2705_s5 + $0x78] sm:$0xf0] }
   0xc   :  { %v147_v23 = vmul.f32 %v1665_v20, %v146_v22  ;;  %463 = vmatpush.bf16.msra.mxu2 %v1404_v61  ;;  %v1369_v22 = vld [vmem:[%s2705_s5 + $0x90] sm:$0xf0]  ;;  %v1364_v46 = vor.u32 %v1600_v44, %v1361_v45  ;;  %v1335_v47 = vld [vmem:[%s2705_s5 + $0x40] sm:$0xf]  ;;  %v1597_v48 = vld [vmem:[%s2705_s5 + $0x4c] sm:$0xf0] }
   0xd   :  { %444 = vmatpush.bf16.msra.mxu1 %v1400_v57  ;;  %482 = vmatpush.bf16.msra.mxu3 %v1408_v62  ;;  %v1595_v49 = vld [vmem:[%s2705_s5 + $0x44] sm:$0xf]  ;;  %v1336_v50 = vor.u32 %v1597_v48, %v1335_v47  ;;  %v1337_v51 = vld [vmem:[%s2705_s5 + $0x50] sm:$0xf0]  ;;  %v1343_v52 = vld [vmem:[%s2705_s5 + $0x48] sm:$0xf] }
   0xe   :  { %120 = vmatpush.bf16.msra.mxu0 %v1583_v3  ;;  %v148_v24 = vadd.f32 %v1665_v20, %v147_v23  ;;  %v1609_v3 = vld [vmem:[%s2705_s5 + $0xac] sm:$0xf0]  ;;  %v1375_v23 = vld [vmem:[%s2705_s5 + $0x88] sm:$0xf]  ;;  %v1340_v54 = vor.u32 %v1595_v49, %v1337_v51  ;;  %v1596_v56 = vld [vmem:[%s2705_s5 + $0x4c] sm:$0xf] }
   0xf   :  { %v1345_v57 = vld [vmem:[%s2705_s5 + $0x58] sm:$0xf0]  ;;  %v1319_v59 = vld [vmem:[%s2705_s5 + $0x20] sm:$0xf]  ;;  %v1593_v60 = vld [vmem:[%s2705_s5 + $0x2c] sm:$0xf0] }
  0x10   :  { %v1839_v25 = vsel %vm149_vm0, %v1665_v20, %v148_v24  ;;  %v1603_v20 = vld [vmem:[%s2705_s5 + $0x84] sm:$0xf]  ;;  %v1606_v24 = vld [vmem:[%s2705_s5 + $0x94] sm:$0xf0]  ;;  %v1348_v58 = vor.u32 %v1596_v56, %v1345_v57  ;;  %v1320_v62 = vor.u32 %v1593_v60, %v1319_v59  ;;  %v1321_v63 = vld [vmem:[%s2705_s5 + $0x30] sm:$0xf0] }
  0x11   :  { %v1591_v61 = vld [vmem:[%s2705_s5 + $0x24] sm:$0xf]  ;;  %v1327_v0 = vld [vmem:[%s2705_s5 + $0x28] sm:$0xf]  ;;  %v1662_v60 = vld [vmem:[%s2704_s4] ss:$0 sm:$0xff] }
  0x12   :  { %121 = vmatpush.bf16.msra.mxu0 %v1582_v4  ;;  %v1607_v4 = vld [vmem:[%s2705_s5 + $0xa4] sm:$0xf] }
  0x16   :  { %122 = vmatpush.bf16.msra.mxu0 %v1581_v5  ;;  %v1384_v5 = vor.u32 %v1609_v3, %v1383_v2  ;;  %v1324_v2 = vor.u32 %v1591_v61, %v1321_v63 }
  0x18   :  { %445 = vmatpush.bf16.msra.mxu1 %v1384_v5  ;;  %v1329_v5 = vld [vmem:[%s2705_s5 + $0x38] sm:$0xf0] }
  0x1a   :  { %123 = vmatpush.bf16.msra.mxu0 %v1580_v6  ;;  %v1385_v6 = vld [vmem:[%s2705_s5 + $0xb0] sm:$0xf0] }
  0x1e   :  { %124 = vmatpush.bf16.msra.mxu0 %v1579_v7  ;;  %v1391_v7 = vld [vmem:[%s2705_s5 + $0xa8] sm:$0xf] }
  0x21   :  { %125 = vmatmul.bf16.vlgmr.msra.gmra.mxu0 %v1577_v8  ;;  %v1610_v8 = vld [vmem:[%s2705_s5 + $0xb4] sm:$0xf0] }
  0x22   :  { %500 = vmatpush.bf16.msrb.mxu0 %v1428_v53  ;;  %v1598_v53 = vld [vmem:[%s2705_s5 + $0x54] sm:$0xf0] }
  0x23   :  { %v1344_v55 = vor.u32 %v1598_v53, %v1343_v52 }
  0x26   :  { %501 = vmatpush.bf16.msrb.mxu0 %v1412_v1  ;;  %v1594_v1 = vld [vmem:[%s2705_s5 + $0x34] sm:$0xf0] }
  0x27   :  { %v1328_v3 = vor.u32 %v1594_v1, %v1327_v0 }
  0x31   :  { %130 = vmatmul.bf16.gmra.mxu0 %v1578_v9  ;;  %v1388_v9 = vor.u32 %v1607_v4, %v1385_v6  ;;  %v1592_v4 = vld [vmem:[%s2705_s5 + $0x2c] sm:$0xf] }
  0x33   :  { %464 = vmatpush.bf16.msra.mxu2 %v1388_v9  ;;  %v1303_v9 = vld [vmem:[%s2705_s5] sm:$0xf] }
  0x9e   :  { %v126_v11 = vpop.f32.mrf.mxu0 }
  0x9f   :  { %v1827_v12 = vadd.f32 %v1660_v10, %v126_v11  ;;  %v1608_v11 = vld [vmem:[%s2705_s5 + $0xac] sm:$0xf] }
  0xa1   :  { %136 = vadd.xlane.f32.xlu0 %v1827_v12 }
  0xa6   :  { %v128_v13 = vpop.f32.mrf.mxu0 }
  0xa7   :  { %v1830_v14 = vadd.f32 %v1660_v10, %v128_v13  ;;  %v1393_v13 = vld [vmem:[%s2705_s5 + $0xb8] sm:$0xf0] }
  0xa9   :  { %138 = vadd.xlane.f32.xlu0 %v1830_v14 }
  0xae   :  { %v131_v15 = vpop.f32.mrf.mxu0 }
  0xaf   :  { %v1833_v16 = vadd.f32 %v1660_v10, %v131_v15  ;;  %v1396_v15 = vor.u32 %v1608_v11, %v1393_v13  ;;  %v1587_v11 = vld [vmem:[%s2705_s5 + $0x4] sm:$0xf] }
  0xb1   :  { %140 = vadd.xlane.f32.xlu1 %v1833_v16  ;;  %502 = vmatpush.bf16.msrb.mxu0 %v1396_v15  ;;  %v1305_v15 = vld [vmem:[%s2705_s5 + $0x10] sm:$0xf0] }
  0xb6   :  { %v133_v17 = vpop.f32.mrf.mxu0 }
  0xb7   :  { %v1836_v18 = vadd.f32 %v1660_v10, %v133_v17  ;;  %v1392_v10 = vor.u32 %v1610_v8, %v1391_v7  ;;  %v1367_v17 = vld [vmem:[%s2705_s5 + $0x80] sm:$0xf]  ;;  %v1332_v7 = vor.u32 %v1592_v4, %v1329_v5 }
  0xb8   :  { %v1368_v21 = vor.u32 %v1605_v19, %v1367_v17  ;;  %v1311_v17 = vld [vmem:[%s2705_s5 + $0x8] sm:$0xf]  ;;  %v1590_v19 = vld [vmem:[%s2705_s5 + $0x14] sm:$0xf0] }
  0xb9   :  { %142 = vadd.xlane.f32.xlu1 %v1836_v18  ;;  %483 = vmatpush.bf16.msra.mxu3 %v1392_v10  ;;  %v1589_v10 = vld [vmem:[%s2705_s5 + $0xc] sm:$0xf0] }
  0xba   :  { %446 = vmatpush.bf16.msra.mxu1 %v1368_v21  ;;  %v1304_v13 = vor.u32 %v1589_v10, %v1303_v9  ;;  %v1308_v21 = vor.u32 %v1587_v11, %v1305_v15 }
 0x114   :  { %v137_v26 = vpop.xlane.xlu0 %136 }
 0x115   :  { %v151_v27 = vmul.f32 %v1839_v25, %v137_v26  ;;  %v1372_v26 = vor.u32 %v1603_v20, %v1369_v22  ;;  %v1312_v22 = vor.u32 %v1590_v19, %v1311_v17 }
 0x117   :  { %v1843_v28 = vsub.f32 %v1827_v12, %v151_v27  ;;  %v1376_v27 = vor.u32 %v1606_v24, %v1375_v23  ;;  %465 = vmatpush.bf16.msra.mxu2 %v1372_v26  ;;  %v1588_v23 = vld [vmem:[%s2705_s5 + $0xc] sm:$0xf]  ;;  %v1313_v24 = vld [vmem:[%s2705_s5 + $0x18] sm:$0xf0] }
 0x118   :  { %v1316_v26 = vor.u32 %v1588_v23, %v1313_v24 }
 0x119   :  { %v159_v29 = vmul.f32 %v1843_v28, %v1843_v28  ;;  %484 = vmatpush.bf16.msra.mxu3 %v1376_v27 }
 0x11b   :  { %163 = vadd.xlane.f32.xlu2 %v159_v29  ;;  %v1604_v29 = vld [vmem:[%s2705_s5 + $0x8c] sm:$0xf] }
 0x11c   :  { %v139_v30 = vpop.xlane.xlu0 %138 }
 0x11d   :  { %v152_v31 = vmul.f32 %v1839_v25, %v139_v30  ;;  %v1377_v30 = vld [vmem:[%s2705_s5 + $0x98] sm:$0xf0] }
 0x11f   :  { %v1849_v32 = vsub.f32 %v1830_v14, %v152_v31  ;;  %v1380_v31 = vor.u32 %v1604_v29, %v1377_v30 }
 0x121   :  { %v160_v33 = vmul.f32 %v1849_v32, %v1849_v32  ;;  %503 = vmatpush.bf16.msrb.mxu0 %v1380_v31 }
 0x123   :  { %165 = vadd.xlane.f32.xlu2 %v160_v33  ;;  %v1351_v33 = vld [vmem:[%s2705_s5 + $0x60] sm:$0xf] }
 0x124   :  { %v141_v34 = vpop.xlane.xlu1 %140 }
 0x125   :  { %v153_v35 = vmul.f32 %v1839_v25, %v141_v34  ;;  %v1601_v34 = vld [vmem:[%s2705_s5 + $0x6c] sm:$0xf0]  ;;  %504 = vmatpush.bf16.msrb.mxu0 %v1364_v46 }
 0x127   :  { %v1855_v36 = vsub.f32 %v1833_v16, %v153_v35  ;;  %v1599_v35 = vld [vmem:[%s2705_s5 + $0x64] sm:$0xf] }
 0x129   :  { %v161_v37 = vmul.f32 %v1855_v36, %v1855_v36  ;;  %505 = vmatpush.bf16.msrb.mxu0 %v1348_v58 }
 0x12b   :  { %167 = vadd.xlane.f32.xlu0 %v161_v37  ;;  %v1352_v37 = vor.u32 %v1601_v34, %v1351_v33 }
 0x12c   :  { %v143_v38 = vpop.xlane.xlu1 %142 }
 0x12d   :  { %v154_v39 = vmul.f32 %v1839_v25, %v143_v38  ;;  %v1353_v38 = vld [vmem:[%s2705_s5 + $0x70] sm:$0xf0]  ;;  %447 = vmatpush.bf16.msra.mxu1 %v1352_v37  ;;  %506 = vmatpush.bf16.msrb.mxu0 %v1332_v7 }
 0x12e   :  { %v1356_v42 = vor.u32 %v1599_v35, %v1353_v38 }
 0x12f   :  { %v1861_v40 = vsub.f32 %v1836_v18, %v154_v39  ;;  %v1359_v39 = vld [vmem:[%s2705_s5 + $0x68] sm:$0xf] }
 0x130   :  { %466 = vmatpush.bf16.msra.mxu2 %v1356_v42 }
 0x131   :  { %v162_v41 = vmul.f32 %v1861_v40, %v1861_v40  ;;  %448 = vmatpush.bf16.msra.mxu1 %v1336_v50  ;;  %507 = vmatpush.bf16.msrb.mxu0 %v1316_v26 }
 0x133   :  { %169 = vadd.xlane.f32.xlu1 %v162_v41  ;;  %v1602_v41 = vld [vmem:[%s2705_s5 + $0x74] sm:$0xf0] }
 0x134   :  { %v1360_v43 = vor.u32 %v1602_v41, %v1359_v39  ;;  %467 = vmatpush.bf16.msra.mxu2 %v1340_v54  ;;  %v1661_v54 = vld [vmem:[%s2703_s3] ss:$0 sm:$0xff] }
 0x135   :  { %449 = vmatpush.bf16.msra.mxu1 %v1320_v62 }
 0x136   :  { %485 = vmatpush.bf16.msra.mxu3 %v1360_v43 }
 0x138   :  { %468 = vmatpush.bf16.msra.mxu2 %v1324_v2 }
 0x139   :  { %450 = vmatpush.bf16.msra.mxu1 %v1304_v13 }
 0x13a   :  { %486 = vmatpush.bf16.msra.mxu3 %v1344_v55 }
 0x13c   :  { %469 = vmatpush.bf16.msra.mxu2 %v1308_v21  ;;  %v1626_v21 = vld [vmem:[%s2707_s7 + $0x38] sm:$0xff] }
 0x13d   :  { %1123 = vmatpush.bf16.msrb.mxu1 %v1626_v21 }
 0x13e   :  { %487 = vmatpush.bf16.msra.mxu3 %v1328_v3 }
 0x142   :  { %488 = vmatpush.bf16.msra.mxu3 %v1312_v22 }
 0x18e   :  { %v164_v6 = vpop.xlane.xlu2 %163 }
 0x18f   :  { %v171_v8 = vmul.f32 %v164_v6, %v1839_v25 }
 0x191   :  { %v175_v20 = vadd.f32 1e-05, %v171_v8 }
 0x193   :  { %1666 = vrsqrt.f32 %v175_v20  ;;  %vm185_vm2 = vweird.f32 %v175_v20 }
 0x196   :  { %v166_v27 = vpop.xlane.xlu2 %165 }
 0x197   :  { %v172_v29 = vmul.f32 %v166_v27, %v1839_v25 }
 0x199   :  { %v1667_v30 = vpop.eup %1666  ;;  %v176_v31 = vadd.f32 1e-05, %v172_v29 }
 0x19a   :  { %v180_v33 = vmul.f32 %v1667_v30, %v175_v20  ;;  %vm186_vm1 = vweird.f32 %v1667_v30 }
 0x19b   :  { %1668 = vrsqrt.f32 %v176_v31  ;;  %vm187_vm3 = vmor %vm185_vm2, %vm186_vm1  ;;  %vm195_vm5 = vweird.f32 %v176_v31 }
 0x19c   :  { %v181_v34 = vmul.f32 %v1667_v30, %v180_v33 }
 0x19e   :  { %v182_v35 = vmul.f32 0.5, %v181_v34  ;;  %v168_v37 = vpop.xlane.xlu0 %167 }
 0x19f   :  { %v173_v38 = vmul.f32 %v168_v37, %v1839_v25  ;;  %v1625_v37 = vld [vmem:[%s2707_s7 + $0x30] sm:$0xff] }
 0x1a0   :  { %v183_v39 = vsub.f32 1.5, %v182_v35  ;;  %1124 = vmatpush.bf16.msrb.mxu1 %v1625_v37 }
 0x1a1   :  { %v1669_v41 = vpop.eup %1668  ;;  %v177_v42 = vadd.f32 1e-05, %v173_v38  ;;  %v2104_v38 = vld [vmem:[%s2707_s7 + $0xf0] sm:$0xff] }
 0x1a2   :  { %v184_v43 = vmul.f32 %v1667_v30, %v183_v39  ;;  %v190_v44 = vmul.f32 %v1669_v41, %v176_v31  ;;  %vm196_vm4 = vweird.f32 %v1669_v41 }
 0x1a3   :  { %1670 = vrsqrt.f32 %v177_v42  ;;  %vm197_vm6 = vmor %vm195_vm5, %vm196_vm4  ;;  %vm205_vm8 = vweird.f32 %v177_v42 }
 0x1a4   :  { %v191_v45 = vmul.f32 %v1669_v41, %v190_v44  ;;  %v188_v46 = vsel %vm187_vm3, %v1667_v30, %v184_v43 }
 0x1a5   :  { %v219_v52 = vmul.f32 %v188_v46, %v1843_v28  ;;  %v1642_v46 = vld [vmem:[%s2707_s7 + $0xb8] sm:$0xff] }
 0x1a6   :  { %v192_v47 = vmul.f32 0.5, %v191_v45  ;;  %v170_v48 = vpop.xlane.xlu1 %169  ;;  %v1634_v45 = vld [vmem:[%s2707_s7 + $0x78] sm:$0xff]  ;;  %1161 = vmatpush.bf16.msrb.mxu3 %v1642_v46 }
 0x1a7   :  { %v174_v49 = vmul.f32 %v170_v48, %v1839_v25  ;;  %v227_v25 = vmul.f32 %v1661_v54, %v219_v52  ;;  %1142 = vmatpush.bf16.msrb.mxu2 %v1634_v45 }
 0x1a8   :  { %v193_v50 = vsub.f32 1.5, %v192_v47 }
 0x1a9   :  { %v1671_v51 = vpop.eup %1670  ;;  %v178_v53 = vadd.f32 1e-05, %v174_v49  ;;  %v235_v0 = vadd.f32 %v1662_v60, %v227_v25 }
 0x1aa   :  { %v194_v55 = vmul.f32 %v1669_v41, %v193_v50  ;;  %v200_v56 = vmul.f32 %v1671_v51, %v177_v42  ;;  %vm206_vm7 = vweird.f32 %v1671_v51  ;;  %v1624_v50 = vld [vmem:[%s2707_s7 + $0x28] sm:$0xff] }
 0x1ab   :  { %1672 = vrsqrt.f32 %v178_v53  ;;  %vm207_vm9 = vmor %vm205_vm8, %vm206_vm7  ;;  %vm215_vm11 = vweird.f32 %v178_v53  ;;  %1125 = vmatpush.bf16.msrb.mxu1 %v1624_v50 }
 0x1ac   :  { %v198_v57 = vsel %vm197_vm6, %v1669_v41, %v194_v55  ;;  %v201_v58 = vmul.f32 %v1671_v51, %v200_v56 }
 0x1ad   :  { %v220_v59 = vmul.f32 %v198_v57, %v1849_v32  ;;  %v1633_v57 = vld [vmem:[%s2707_s7 + $0x70] sm:$0xff] }
 0x1ae   :  { %v202_v28 = vmul.f32 0.5, %v201_v58  ;;  %1143 = vmatpush.bf16.msrb.mxu2 %v1633_v57 }
 0x1af   :  { %v228_v61 = vmul.f32 %v1661_v54, %v220_v59 }
 0x1b0   :  { %v203_v62 = vsub.f32 1.5, %v202_v28 }
 0x1b1   :  { %v1673_v63 = vpop.eup %1672  ;;  %v236_v1 = vadd.f32 %v1662_v60, %v228_v61 }
 0x1b2   :  { %v204_v2 = vmul.f32 %v1671_v51, %v203_v62  ;;  %v210_v3 = vmul.f32 %v1673_v63, %v178_v53  ;;  %vm216_vm10 = vweird.f32 %v1673_v63 }
 0x1b3   :  { %v239_v4 = vpack.c.bf16 %v236_v1, %v235_v0  ;;  %vm217_vm12 = vmor %vm215_vm11, %vm216_vm10  ;;  %v1641_v1 = vld [vmem:[%s2707_s7 + $0xb0] sm:$0xff] }
 0x1b4   :  { %v211_v5 = vmul.f32 %v1673_v63, %v210_v3  ;;  %v208_v32 = vsel %vm207_vm9, %v1671_v51, %v204_v2  ;;  %v2130_v51 = vld [vmem:[%s2707_s7 + $0xe8] sm:$0xff]  ;;  %1162 = vmatpush.bf16.msrb.mxu3 %v1641_v1 }
 0x1b5   :  { %451 = vmatmul.bf16.vlgmr.msra.gmra.mxu1 %v239_v4  ;;  %470 = vmatmul.bf16.vlgmr.msra.gmra.mxu2 %v239_v4  ;;  %v221_v8 = vmul.f32 %v208_v32, %v1855_v36  ;;  %v273_v36 = vld [vmem:[%s2706_s6] sm:$0xf] }
 0x1b6   :  { %v212_v6 = vmul.f32 0.5, %v211_v5  ;;  %489 = vmatmul.bf16.vlgmr.msra.gmra.mxu3 %v239_v4  ;;  %508 = vmatmul.bf16.vlgmr.msrb.gmra.mxu0 %v239_v4  ;;  %v2077_v22 = vperm.slane %v273_v36, 3  ;;  %v2084_v24 = vperm.slane %v273_v36, 0  ;;  %v2094_v34 = vperm.slane %v273_v36, 1  ;;  %v1623_v4 = vld [vmem:[%s2707_s7 + $0x20] sm:$0xff] }
 0x1b7   :  { %v229_v13 = vmul.f32 %v1661_v54, %v221_v8  ;;  %v2096_v35 = vperm.slane %v273_v36, 2  ;;  %v2158_v5 = vld [vmem:[%s2707_s7 + $0xe0] sm:$0xff]  ;;  %1126 = vmatpush.bf16.msrb.mxu1 %v1623_v4 }
 0x1b8   :  { %v213_v7 = vsub.f32 1.5, %v212_v6 }
 0x1b9   :  { %v237_v17 = vadd.f32 %v1662_v60, %v229_v13  ;;  %v1622_v13 = vld [vmem:[%s2707_s7 + $0x18] sm:$0xff] }
 0x1ba   :  { %v214_v9 = vmul.f32 %v1673_v63, %v213_v7  ;;  %v1632_v7 = vld [vmem:[%s2707_s7 + $0x68] sm:$0xff] }
 0x1bb   :  { %1144 = vmatpush.bf16.msrb.mxu2 %v1632_v7  ;;  %1127 = vmatpush.bf16.msrb.mxu1 %v1622_v13  ;;  %v1631_v13 = vld [vmem:[%s2707_s7 + $0x60] sm:$0xff] }
 0x1bc   :  { %v218_v10 = vsel %vm217_vm12, %v1673_v63, %v214_v9 }
 0x1bd   :  { %v222_v11 = vmul.f32 %v218_v10, %v1861_v40  ;;  %v2082_v40 = vld [vmem:[%s2707_s7 + $0xf8] sm:$0xff] }
 0x1be   :  { %1180 = vmatpush.bf16.msra.mxu0 %v2082_v40 }
 0x1bf   :  { %v230_v15 = vmul.f32 %v1661_v54, %v222_v11  ;;  %v1640_v11 = vld [vmem:[%s2707_s7 + $0xa8] sm:$0xff]  ;;  %1145 = vmatpush.bf16.msrb.mxu2 %v1631_v13 }
 0x1c0   :  { %1163 = vmatpush.bf16.msrb.mxu3 %v1640_v11 }
 0x1c1   :  { %v238_v19 = vadd.f32 %v1662_v60, %v230_v15 }
 0x1c2   :  { %1181 = vmatpush.bf16.msra.mxu0 %v2104_v38 }
 0x1c3   :  { %v240_v20 = vpack.c.bf16 %v238_v19, %v237_v17 }
 0x1c5   :  { %456 = vmatmul.bf16.gmra.mxu1 %v240_v20  ;;  %475 = vmatmul.bf16.gmra.mxu2 %v240_v20 }
 0x1c6   :  { %494 = vmatmul.bf16.gmra.mxu3 %v240_v20  ;;  %513 = vmatmul.bf16.gmra.mxu0 %v240_v20 }
 0x1c7   :  { %1182 = vmatpush.bf16.msra.mxu0 %v2130_v51 }
 0x1cb   :  { %1183 = vmatpush.bf16.msra.mxu0 %v2158_v5 }
 0x232   :  { %v452_v23 = vpop.f32.mrf.mxu1 }
 0x233   :  { %v509_v26 = vpop.f32.mrf.mxu0  ;;  %v2092_v30 = vadd.f32 %v452_v23, %v2084_v24 }
 0x234   :  { %v2088_v27 = vadd.f32 %v509_v26, %v2077_v22 }
 0x235   :  { %v1429_v39 = vmul.f32 -1.702, %v2092_v30 }
 0x236   :  { %v1432_v29 = vmul.f32 -1.702, %v2088_v27 }
 0x237   :  { %v551_v52 = vmul.f32 1.442695, %v1429_v39 }
 0x238   :  { %v557_v31 = vmul.f32 1.442695, %v1432_v29  ;;  %v471_v33 = vpop.f32.mrf.mxu2 }
 0x239   :  { %v490_v41 = vpop.f32.mrf.mxu3  ;;  %v2118_v47 = vadd.f32 %v471_v33, %v2094_v34 }
 0x23a   :  { %1674 = vpow2.f32 %v557_v31  ;;  %v454_v43 = vpop.f32.mrf.mxu1  ;;  %v2121_v48 = vadd.f32 %v490_v41, %v2096_v35 }
 0x23b   :  { %v511_v42 = vpop.f32.mrf.mxu0  ;;  %v2133_v53 = vadd.f32 %v454_v43, %v2084_v24  ;;  %v1430_v58 = vmul.f32 -1.702, %v2118_v47  ;;  %1676 = vpow2.f32 %v551_v52 }
 0x23c   :  { %v2108_v44 = vadd.f32 %v511_v42, %v2077_v22  ;;  %v1431_v60 = vmul.f32 -1.702, %v2121_v48 }
 0x23d   :  { %v1433_v28 = vmul.f32 -1.702, %v2133_v53  ;;  %v553_v62 = vmul.f32 1.442695, %v1430_v58 }
 0x23e   :  { %v1436_v49 = vmul.f32 -1.702, %v2108_v44  ;;  %v555_v63 = vmul.f32 1.442695, %v1431_v60 }
 0x23f   :  { %v559_v0 = vmul.f32 1.442695, %v1433_v28 }
 0x240   :  { %v1675_v54 = vpop.eup %1674  ;;  %v565_v55 = vmul.f32 1.442695, %v1436_v49  ;;  %v473_v56 = vpop.f32.mrf.mxu2 }
 0x241   :  { %v2141_v59 = vadd.f32 %v473_v56, %v2094_v34  ;;  %v2143_v25 = vadd.f32 1.0, %v1675_v54  ;;  %v1677_v3 = vpop.eup %1676  ;;  %v492_v6 = vpop.f32.mrf.mxu3 }
 0x242   :  { %1678 = vpow2.f32 %v565_v55  ;;  %v2166_v9 = vadd.f32 1.0, %v1677_v3  ;;  %v2177_v15 = vadd.f32 %v492_v6, %v2096_v35  ;;  %v457_v20 = vpop.f32.mrf.mxu1 }
 0x243   :  { %v1434_v61 = vmul.f32 -1.702, %v2141_v59  ;;  %1680 = vrcp.f32 %v2143_v25  ;;  %v2189_v37 = vadd.f32 %v457_v20, %v2084_v24  ;;  %v514_v39 = vpop.f32.mrf.mxu0  ;;  %vm649_vm13 = vweird.f32 %v2143_v25 }
 0x244   :  { %1682 = vpow2.f32 %v553_v62  ;;  %v1435_v29 = vmul.f32 -1.702, %v2177_v15  ;;  %v608_v46 = vand.u32 2147483647, %v2166_v9  ;;  %v610_v52 = vand.u32 2147483648, %v2166_v9 }
 0x245   :  { %v561_v2 = vmul.f32 1.442695, %v1434_v61  ;;  %1684 = vpow2.f32 %v555_v63  ;;  %v1437_v55 = vmul.f32 -1.702, %v2189_v37  ;;  %v653_v56 = vand.u32 2147483647, %v2143_v25 }
 0x246   :  { %1686 = vpow2.f32 %v559_v0  ;;  %v563_v50 = vmul.f32 1.442695, %v1435_v29  ;;  %v655_v28 = vand.u32 2147483648, %v2143_v25  ;;  %v2223_v0 = vld [vmem:[%s2707_s7 + $0xd8] sm:$0xff]  ;;  %v2232_v6 = vor.u32 1.1754944e-38, %v610_v52  ;;  %v1621_v52 = vld [vmem:[%s2707_s7 + $0x10] sm:$0xff] }
 0x247   :  { %1688 = vpow2.f32 %v561_v2  ;;  %v567_v3 = vmul.f32 1.442695, %v1437_v55  ;;  %1184 = vmatpush.bf16.msra.mxu0 %v2223_v0  ;;  %vm2248_vm1 = vcmp.eq.f32.partialorder %v653_v56, 8.507059e+37  ;;  %1128 = vmatpush.bf16.msrb.mxu1 %v1621_v52  ;;  %v2325_v29 = vld [vmem:[%s2707_s7 + $0xc8] sm:$0xff]  ;;  %vm604_vm6 = vweird.f32 %v2166_v9 }
 0x248   :  { %v1679_v32 = vpop.eup %1678  ;;  %v476_v58 = vpop.f32.mrf.mxu2 }
 0x249   :  { %v2164_v8 = vpop.eup %1680  ;;  %v2168_v10 = vadd.f32 1.0, %v1679_v32  ;;  %v2228_v4 = vadd.f32 %v476_v58, %v2094_v34 }
 0x24a   :  { %v1683_v17 = vpop.eup %1682  ;;  %v645_v19 = vmul.f32 %v2164_v8, %v2143_v25  ;;  %vm650_vm14 = vweird.f32 %v2164_v8  ;;  %v459_v61 = vpop.f32.mrf.mxu1  ;;  %v2282_v25 = vld [vmem:[%s2707_s7 + $0xd0] sm:$0xff] }
 0x24b   :  { %1690 = vrcp.f32 %v2168_v10  ;;  %v1685_v21 = vpop.eup %1684  ;;  %v2183_v26 = vadd.f32 1.0, %v1683_v17  ;;  %v715_v63 = vand.u32 2147483648, %v2168_v10  ;;  %v713_v2 = vand.u32 2147483647, %v2168_v10  ;;  %v1639_v17 = vld [vmem:[%s2707_s7 + $0xa0] sm:$0xff]  ;;  %vm2267_vm3 = vmor %vm649_vm13, %vm650_vm14  ;;  %1185 = vmatpush.bf16.msra.mxu0 %v2282_v25 }
 0x24c   :  { %1692 = vrcp.f32 %v2166_v9  ;;  %v1687_v36 = vpop.eup %1686  ;;  %v646_v31 = vsub.f32 1.0, %v645_v19  ;;  %v2186_v33 = vadd.f32 1.0, %v1685_v21  ;;  %vm709_vm0 = vweird.f32 %v2168_v10  ;;  %1164 = vmatpush.bf16.msrb.mxu3 %v1639_v17 }
 0x24d   :  { %v1689_v23 = vpop.eup %1688  ;;  %v2191_v41 = vadd.f32 1.0, %v1687_v36  ;;  %1694 = vrcp.f32 %v2183_v26  ;;  %v2237_v11 = vadd.f32 %v459_v61, %v2084_v24  ;;  %v2259_v21 = vadd.f32 %v514_v39, %v2077_v22  ;;  %v516_v36 = vpop.f32.mrf.mxu0 }
 0x24e   :  { %v2195_v43 = vadd.f32 1.0, %v1689_v23  ;;  %v647_v54 = vmul.f32 %v2164_v8, %v646_v31  ;;  %1696 = vrcp.f32 %v2186_v33  ;;  %v623_v31 = vand.u32 2147483647, %v2183_v26 }
 0x24f   :  { %1698 = vrcp.f32 %v2191_v41  ;;  %vm714_vm4 = vcmp.eq.f32.partialorder %v713_v2, 8.507059e+37  ;;  %v1438_v56 = vmul.f32 -1.702, %v2228_v4  ;;  %v1441_v61 = vmul.f32 -1.702, %v2237_v11  ;;  %1186 = vmatpush.bf16.msra.mxu0 %v2325_v29 }
 0x250   :  { %1700 = vrcp.f32 %v2195_v43  ;;  %v648_v1 = vadd.f32 %v2164_v8, %v647_v54  ;;  %v640_v2 = vand.u32 2147483648, %v2186_v33  ;;  %vm619_vm7 = vweird.f32 %v2183_v26 }
 0x251   :  { %v2193_v42 = vpop.eup %1690  ;;  %1702 = vpow2.f32 %v563_v50  ;;  %v716_v50 = vor.u32 1.1754944e-38, %v715_v63  ;;  %v575_v24 = vmul.f32 1.442695, %v1441_v61  ;;  %vm634_vm8 = vweird.f32 %v2186_v33 }
 0x252   :  { %v2197_v45 = vpop.eup %1692  ;;  %v705_v49 = vmul.f32 %v2193_v42, %v2168_v10  ;;  %vm710_vm15 = vweird.f32 %v2193_v42  ;;  %v656_v10 = vor.u32 1.1754944e-38, %v655_v28  ;;  %1704 = vpow2.f32 %v567_v3  ;;  %v495_v3 = vpop.f32.mrf.mxu3 }
 0x253   :  { %v2212_v60 = vmul.f32 %v2197_v45, %v2166_v9  ;;  %v2230_v32 = vpop.eup %1694  ;;  %vm2254_vm2 = vmor %vm709_vm0, %vm710_vm15  ;;  %vm605_vm5 = vweird.f32 %v2197_v45  ;;  %vm664_vm9 = vweird.f32 %v2191_v41  ;;  %vm679_vm15 = vweird.f32 %v2195_v43 }
 0x254   :  { %v706_v57 = vsub.f32 1.0, %v705_v49  ;;  %v2246_v19 = vpop.eup %1696  ;;  %v625_v49 = vand.u32 2147483648, %v2183_v26  ;;  %v2293_v58 = vmul.f32 %v2230_v32, %v2183_v26  ;;  %vm620_vm10 = vweird.f32 %v2230_v32  ;;  %vm2404_vm14 = vmor %vm604_vm6, %vm605_vm5 }
 0x255   :  { %v2261_v23 = vpop.eup %1698  ;;  %v601_v55 = vsub.f32 1.0, %v2212_v60  ;;  %v1638_v60 = vld [vmem:[%s2707_s7 + $0x98] sm:$0xff]  ;;  %v630_v63 = vmul.f32 %v2246_v19, %v2186_v33  ;;  %vm635_vm11 = vweird.f32 %v2246_v19  ;;  %vm2415_vm0 = vcmp.eq.f32.partialorder %v608_v46, 8.507059e+37 }
 0x256   :  { %v707_v62 = vmul.f32 %v2193_v42, %v706_v57  ;;  %v2284_v54 = vpop.eup %1700  ;;  %v660_v13 = vmul.f32 %v2261_v23, %v2191_v41  ;;  %1165 = vmatpush.bf16.msrb.mxu3 %v1638_v60  ;;  %v2350_v60 = vor.u32 1.1754944e-38, %v640_v2  ;;  %vm665_vm12 = vweird.f32 %v2261_v23 }
 0x257   :  { %v1703_v57 = vpop.eup %1702  ;;  %v675_v17 = vmul.f32 %v2284_v54, %v2195_v43  ;;  %v602_v52 = vmul.f32 %v2197_v45, %v601_v55  ;;  %v1637_v55 = vld [vmem:[%s2707_s7 + $0x90] sm:$0xff]  ;;  %vm2457_vm6 = vmor %vm664_vm9, %vm665_vm12 }
 0x258   :  { %v708_v7 = vadd.f32 %v2193_v42, %v707_v62  ;;  %v2297_v62 = vadd.f32 %v516_v36, %v2077_v22  ;;  %v2310_v22 = vadd.f32 1.0, %v1703_v57  ;;  %v1620_v36 = vld [vmem:[%s2707_s7 + $0x8] sm:$0xff]  ;;  %v1705_v20 = vpop.eup %1704  ;;  %v2334_v57 = vadd.f32 %v495_v3, %v2096_v35 }
 0x259   :  { %1129 = vmatpush.bf16.msrb.mxu1 %v1620_v36  ;;  %v661_v3 = vsub.f32 1.0, %v660_v13  ;;  %v676_v36 = vsub.f32 1.0, %v675_v17  ;;  %v1628_v17 = vld [vmem:[%s2707_s7 + $0x48] sm:$0xff] }
 0x25a   :  { %v712_v39 = vsel %vm2254_vm2, %v2193_v42, %v708_v7  ;;  %v652_v42 = vsel %vm2267_vm3, %v2164_v8, %v648_v1  ;;  %v1630_v8 = vld [vmem:[%s2707_s7 + $0x58] sm:$0xff]  ;;  %1706 = vrcp.f32 %v2310_v22  ;;  %v1444_v61 = vmul.f32 -1.702, %v2297_v62  ;;  %1166 = vmatpush.bf16.msrb.mxu3 %v1637_v55  ;;  %v1619_v1 = vld [vmem:[%s2707_s7] sm:$0xff] }
 0x25b   :  { %v717_v28 = vsel %vm714_vm4, %v716_v50, %v712_v39  ;;  %v657_v7 = vsel %vm2248_vm1, %v656_v10, %v652_v42  ;;  %1146 = vmatpush.bf16.msrb.mxu2 %v1630_v8  ;;  %v1440_v39 = vmul.f32 -1.702, %v2259_v21  ;;  %v569_v50 = vmul.f32 1.442695, %v1438_v56  ;;  %vm2423_vm1 = vmor %vm619_vm7, %vm620_vm10 }
 0x25c   :  { %v846_v10 = vmul.f32 %v717_v28, %v2108_v44  ;;  %v616_v42 = vsub.f32 1.0, %v2293_v58  ;;  %v1629_v44 = vld [vmem:[%s2707_s7 + $0x50] sm:$0xff]  ;;  %v842_v56 = vmul.f32 %v657_v7, %v2088_v27  ;;  %v631_v58 = vsub.f32 1.0, %v630_v63  ;;  %v2358_v27 = vld [vmem:[%s2707_s7 + $0xc0] sm:$0xff]  ;;  %vm2443_vm4 = vmor %vm634_vm8, %vm635_vm11 }
 0x25d   :  { %v2346_v28 = vadd.f32 1.0, %v1705_v20  ;;  %1708 = vpow2.f32 %v575_v24  ;;  %v2348_v8 = vor.u32 1.1754944e-38, %v625_v49  ;;  %v668_v63 = vand.u32 2147483647, %v2191_v41  ;;  %1130 = vmatpush.bf16.msrb.mxu1 %v1619_v1  ;;  %1187 = vmatpush.bf16.msra.mxu0 %v2358_v27  ;;  %v1636_v24 = vld [vmem:[%s2707_s7 + $0x88] sm:$0xff] }
 0x25e   :  { %v858_v7 = vpack.c.bf16 %v846_v10, %v842_v56  ;;  %v573_v49 = vmul.f32 1.442695, %v1440_v39  ;;  %1710 = vpow2.f32 %v569_v50  ;;  %v1439_v2 = vmul.f32 -1.702, %v2334_v57  ;;  %1167 = vmatpush.bf16.msrb.mxu3 %v1636_v24 }
 0x25f   :  { %1147 = vmatpush.bf16.msrb.mxu2 %v1629_v44  ;;  %v581_v13 = vmul.f32 1.442695, %v1444_v61  ;;  %v2374_v10 = vadd.f32 %v2197_v45, %v602_v52  ;;  %v617_v39 = vmul.f32 %v2230_v32, %v616_v42  ;;  %v632_v50 = vmul.f32 %v2246_v19, %v631_v58 }
 0x260   :  { %v2371_v20 = vpop.eup %1706  ;;  %1712 = vrcp.f32 %v2346_v28  ;;  %v662_v1 = vmul.f32 %v2261_v23, %v661_v3  ;;  %v670_v61 = vand.u32 2147483648, %v2191_v41  ;;  %v677_v44 = vmul.f32 %v2284_v54, %v676_v36  ;;  %1188 = vmatmul.bf16.vlgmr.msra.gmra.mxu0 %v858_v7  ;;  %v478_v3 = vpop.f32.mrf.mxu2  ;;  %v1627_v36 = vld [vmem:[%s2707_s7 + $0x40] sm:$0xff] }
 0x261   :  { %1651 = vmatpush.bf16.msra.mxu1 %v2082_v40  ;;  %v690_v55 = vmul.f32 %v2371_v20, %v2310_v22  ;;  %1714 = vpow2.f32 %v573_v49  ;;  %vm2388_vm13 = vcmp.eq.f32.partialorder %v668_v63, 8.507059e+37  ;;  %v571_v56 = vmul.f32 1.442695, %v1439_v2 }
 0x262   :  { %1716 = vpow2.f32 %v581_v13  ;;  %v618_v7 = vadd.f32 %v2230_v32, %v617_v39  ;;  %v633_v2 = vadd.f32 %v2246_v19, %v632_v50  ;;  %v683_v13 = vand.u32 2147483647, %v2195_v43 }
 0x263   :  { %1148 = vmatpush.bf16.msrb.mxu2 %v1628_v17  ;;  %v1709_v52 = vpop.eup %1708  ;;  %v691_v42 = vsub.f32 1.0, %v690_v55  ;;  %v1635_v17 = vld [vmem:[%s2707_s7 + $0x80] sm:$0xff]  ;;  %vm2429_vm2 = vcmp.eq.f32.partialorder %v623_v31, 8.507059e+37  ;;  %v678_v9 = vadd.f32 %v2284_v54, %v677_v44  ;;  %vm680_vm3 = vweird.f32 %v2284_v54 }
 0x264   :  { %v2392_v58 = vadd.f32 1.0, %v1709_v52  ;;  %v1711_v49 = vpop.eup %1710  ;;  %1168 = vmatpush.bf16.msrb.mxu3 %v1635_v17  ;;  %v685_v31 = vand.u32 2147483648, %v2195_v43  ;;  %vm695_vm5 = vweird.f32 %v2371_v20  ;;  %vm2473_vm7 = vmor %vm679_vm15, %vm680_vm3  ;;  %vm694_vm8 = vweird.f32 %v2310_v22 }
 0x265   :  { %1652 = vmatpush.bf16.msra.mxu1 %v2104_v38  ;;  %v663_v38 = vadd.f32 %v2261_v23, %v662_v1  ;;  %v692_v46 = vmul.f32 %v2371_v20, %v691_v42  ;;  %v2451_v1 = vadd.f32 %v478_v3, %v2094_v34  ;;  %v700_v42 = vand.u32 2147483648, %v2310_v22  ;;  %vm2491_vm9 = vmor %vm694_vm8, %vm695_vm5 }
 0x266   :  { %v2437_v55 = vpop.eup %1712  ;;  %1718 = vrcp.f32 %v2392_v58  ;;  %v607_v34 = vsel %vm2404_vm14, %v2197_v45, %v2374_v10  ;;  %v671_v3 = vor.u32 1.1754944e-38, %v670_v61  ;;  %v622_v45 = vsel %vm2423_vm1, %v2230_v32, %v618_v7 }
 0x267   :  { %1149 = vmatpush.bf16.msrb.mxu2 %v1627_v36  ;;  %v693_v52 = vadd.f32 %v2371_v20, %v692_v46  ;;  %v2463_v36 = vadd.f32 1.0, %v1711_v49  ;;  %1720 = vpow2.f32 %v571_v56  ;;  %v1715_v17 = vpop.eup %1714  ;;  %v698_v49 = vand.u32 2147483647, %v2310_v22 }
 0x268   :  { %v1717_v56 = vpop.eup %1716  ;;  %v667_v10 = vsel %vm2457_vm6, %v2261_v23, %v663_v38  ;;  %v682_v43 = vsel %vm2473_vm7, %v2284_v54, %v678_v9  ;;  %v637_v32 = vsel %vm2443_vm4, %v2246_v19, %v633_v2  ;;  %v686_v22 = vor.u32 1.1754944e-38, %v685_v31 }
 0x269   :  { %1653 = vmatpush.bf16.msra.mxu1 %v2130_v51  ;;  %v720_v51 = vmul.f32 %v2437_v55, %v2346_v28  ;;  %v697_v23 = vsel %vm2491_vm9, %v2371_v20, %v693_v52  ;;  %v1442_v54 = vmul.f32 -1.702, %v2451_v1  ;;  %vm684_vm10 = vcmp.eq.f32.partialorder %v683_v13, 8.507059e+37 }
 0x26a   :  { %v701_v63 = vor.u32 1.1754944e-38, %v700_v42  ;;  %v2504_v7 = vadd.f32 1.0, %v1715_v17  ;;  %1722 = vrcp.f32 %v2463_v36  ;;  %v672_v38 = vsel %vm2388_vm13, %v671_v3, %v667_v10 }
 0x26b   :  { %v687_v9 = vsel %vm684_vm10, %v686_v22, %v682_v43  ;;  %vm699_vm11 = vcmp.eq.f32.partialorder %v698_v49, 8.507059e+37  ;;  %v2511_v19 = vadd.f32 1.0, %v1717_v56  ;;  %v2735_v2 = vand.u32 2147483647, %v2186_v33 }
 0x26c   :  { %v2507_v39 = vpop.eup %1718  ;;  %v702_v13 = vsel %vm699_vm11, %v701_v63, %v697_v23  ;;  %v721_v46 = vsub.f32 1.0, %v720_v51  ;;  %v612_v40 = vsel %vm2415_vm0, %v2232_v6, %v607_v34  ;;  %v627_v31 = vsel %vm2429_vm2, %v2348_v8, %v622_v45  ;;  %v497_v6 = vpop.f32.mrf.mxu3 }
 0x26d   :  { %1654 = vmatpush.bf16.msra.mxu1 %v2158_v5  ;;  %v1721_v20 = vpop.eup %1720  ;;  %vm639_vm12 = vcmp.eq.f32.partialorder %v2735_v2, 8.507059e+37  ;;  %v780_v26 = vmul.f32 %v2507_v39, %v2392_v58  ;;  %v577_v5 = vmul.f32 1.442695, %v1442_v54  ;;  %v843_v52 = vmul.f32 %v672_v38, %v2133_v53 }
 0x26e   :  { %v642_v44 = vsel %vm639_vm12, %v2350_v60, %v637_v32  ;;  %v844_v33 = vmul.f32 %v687_v9, %v2141_v59  ;;  %1724 = vrcp.f32 %v2504_v7  ;;  %v845_v17 = vmul.f32 %v702_v13, %v2177_v15 }
 0x26f   :  { %v781_v42 = vsub.f32 1.0, %v780_v26  ;;  %v2529_v3 = vadd.f32 1.0, %v1721_v20  ;;  %1726 = vrcp.f32 %v2511_v19  ;;  %v839_v60 = vmul.f32 %v612_v40, %v2092_v30 }
 0x270   :  { %v2533_v8 = vpop.eup %1722  ;;  %v840_v53 = vmul.f32 %v627_v31, %v2118_v47  ;;  %v722_v59 = vmul.f32 %v2437_v55, %v721_v46  ;;  %v841_v50 = vmul.f32 %v642_v44, %v2121_v48  ;;  %vm785_vm13 = vweird.f32 %v2507_v39 }
 0x271   :  { %1655 = vmatpush.bf16.msra.mxu1 %v2223_v0  ;;  %v782_v24 = vmul.f32 %v2507_v39, %v781_v42  ;;  %1728 = vpow2.f32 %v577_v5  ;;  %v2543_v34 = vadd.f32 %v497_v6, %v2096_v35  ;;  %v855_v0 = vpack.c.bf16 %v843_v52, %v839_v60 }
 0x272   :  { %v856_v41 = vpack.c.bf16 %v844_v33, %v840_v53  ;;  %v735_v30 = vmul.f32 %v2533_v8, %v2463_v36  ;;  %1730 = vrcp.f32 %v2529_v3  ;;  %v790_v47 = vand.u32 2147483648, %v2392_v58 }
 0x273   :  { %v783_v15 = vadd.f32 %v2507_v39, %v782_v24  ;;  %v857_v49 = vpack.c.bf16 %v845_v17, %v841_v50  ;;  %v723_v56 = vadd.f32 %v2437_v55, %v722_v59  ;;  %vm725_vm14 = vweird.f32 %v2437_v55  ;;  %1131 = vmatmul.bf16.vlgmr.msrb.gmra.mxu1 %v855_v0 }
 0x274   :  { %v2550_v48 = vpop.eup %1724  ;;  %vm784_vm15 = vweird.f32 %v2392_v58  ;;  %v788_v35 = vand.u32 2147483647, %v2392_v58  ;;  %1150 = vmatmul.bf16.vlgmr.msrb.gmra.mxu2 %v856_v41  ;;  %v730_v10 = vand.u32 2147483648, %v2346_v28  ;;  %v1443_v43 = vmul.f32 -1.702, %v2543_v34 }
 0x275   :  { %1656 = vmatpush.bf16.msra.mxu1 %v2282_v25  ;;  %v2556_v45 = vpop.eup %1726  ;;  %vm2561_vm0 = vmor %vm784_vm15, %vm785_vm13  ;;  %1169 = vmatmul.bf16.vlgmr.msrb.gmra.mxu3 %v857_v49  ;;  %vm724_vm1 = vweird.f32 %v2346_v28  ;;  %v728_v61 = vand.u32 2147483647, %v2346_v28  ;;  %v765_v22 = vmul.f32 %v2550_v48, %v2504_v7  ;;  %v736_v23 = vsub.f32 1.0, %v735_v30 }
 0x276   :  { %v787_v58 = vsel %vm2561_vm0, %v2507_v39, %v783_v15  ;;  %vm2571_vm2 = vmor %vm724_vm1, %vm725_vm14  ;;  %v791_v54 = vor.u32 1.1754944e-38, %v790_v47  ;;  %v579_v63 = vmul.f32 1.442695, %v1443_v43  ;;  %vm789_vm3 = vcmp.eq.f32.partialorder %v788_v35, 8.507059e+37 }
 0x277   :  { %v1729_v51 = vpop.eup %1728  ;;  %v727_v28 = vsel %vm2571_vm2, %v2437_v55, %v723_v56  ;;  %v825_v39 = vmul.f32 %v2556_v45, %v2511_v19  ;;  %v731_v20 = vor.u32 1.1754944e-38, %v730_v10  ;;  %vm729_vm4 = vcmp.eq.f32.partialorder %v728_v61, 8.507059e+37 }
 0x278   :  { %v2583_v38 = vadd.f32 1.0, %v1729_v51  ;;  %v2585_v9 = vpop.eup %1730  ;;  %v792_v2 = vsel %vm789_vm3, %v791_v54, %v787_v58  ;;  %1732 = vpow2.f32 %v579_v63  ;;  %v737_v46 = vmul.f32 %v2533_v8, %v736_v23 }
 0x279   :  { %1657 = vmatpush.bf16.msra.mxu1 %v2325_v29  ;;  %v732_v13 = vsel %vm729_vm4, %v731_v20, %v727_v28  ;;  %v766_v29 = vsub.f32 1.0, %v765_v22  ;;  %v750_v55 = vmul.f32 %v2585_v9, %v2529_v3  ;;  %v851_v26 = vmul.f32 %v792_v2, %v2237_v11 }
 0x27a   :  { %1734 = vrcp.f32 %v2583_v38  ;;  %v826_v40 = vsub.f32 1.0, %v825_v39  ;;  %v847_v31 = vmul.f32 %v732_v13, %v2189_v37  ;;  %v775_v44 = vand.u32 2147483648, %v2504_v7 }
 0x27b   :  { %v743_v5 = vand.u32 2147483647, %v2463_v36  ;;  %v767_v33 = vmul.f32 %v2550_v48, %v766_v29  ;;  %v773_v42 = vand.u32 2147483647, %v2504_v7  ;;  %v738_v17 = vadd.f32 %v2533_v8, %v737_v46 }
 0x27c   :  { %vm740_vm5 = vweird.f32 %v2533_v8  ;;  %v751_v6 = vsub.f32 1.0, %v750_v55  ;;  %v827_v11 = vmul.f32 %v2556_v45, %v826_v40  ;;  %v859_v37 = vpack.c.bf16 %v851_v26, %v847_v31 }
 0x27d   :  { %1658 = vmatpush.bf16.msra.mxu1 %v2358_v27  ;;  %vm769_vm6 = vweird.f32 %v2504_v7  ;;  %vm739_vm7 = vweird.f32 %v2463_v36  ;;  %v776_v59 = vor.u32 1.1754944e-38, %v775_v44  ;;  %vm2610_vm9 = vcmp.eq.f32.partialorder %v743_v5, 8.507059e+37 }
 0x27e   :  { %v1733_v52 = vpop.eup %1732  ;;  %vm2606_vm8 = vmor %vm739_vm7, %vm740_vm5  ;;  %v745_v15 = vand.u32 2147483648, %v2463_v36  ;;  %v768_v0 = vadd.f32 %v2550_v48, %v767_v33  ;;  %vm770_vm10 = vweird.f32 %v2550_v48  ;;  %vm2618_vm11 = vcmp.eq.f32.partialorder %v773_v42, 8.507059e+37 }
 0x27f   :  { %v2601_v60 = vadd.f32 1.0, %v1733_v52  ;;  %v742_v30 = vsel %vm2606_vm8, %v2533_v8, %v738_v17  ;;  %v752_v49 = vmul.f32 %v2585_v9, %v751_v6  ;;  %v828_v56 = vadd.f32 %v2556_v45, %v827_v11  ;;  %vm2633_vm14 = vmor %vm769_vm6, %vm770_vm10 }
 0x280   :  { %v1735_v27 = vpop.eup %1734  ;;  %vm830_vm12 = vweird.f32 %v2556_v45  ;;  %v805_v36 = vand.u32 2147483648, %v2583_v38  ;;  %v835_v35 = vand.u32 2147483648, %v2511_v19  ;;  %v803_v25 = vand.u32 2147483647, %v2583_v38 }
 0x281   :  { %v795_v53 = vmul.f32 %v1735_v27, %v2583_v38  ;;  %1736 = vrcp.f32 %v2601_v60  ;;  %vm800_vm13 = vweird.f32 %v1735_v27  ;;  %v746_v43 = vor.u32 1.1754944e-38, %v745_v15 }
 0x282   :  { %vm754_vm15 = vweird.f32 %v2529_v3  ;;  %vm829_vm0 = vweird.f32 %v2511_v19  ;;  %v833_v61 = vand.u32 2147483647, %v2511_v19  ;;  %v772_v58 = vsel %vm2633_vm14, %v2550_v48, %v768_v0 }
 0x283   :  { %v796_v47 = vsub.f32 1.0, %v795_v53  ;;  %1136 = vmatmul.bf16.gmra.mxu1 %v859_v37  ;;  %vm755_vm1 = vweird.f32 %v2585_v9  ;;  %vm2644_vm2 = vmor %vm829_vm0, %vm830_vm12  ;;  %vm799_vm3 = vweird.f32 %v2583_v38  ;;  %v747_v22 = vsel %vm2610_vm9, %v746_v43, %v742_v30 }
 0x284   :  { %v753_v23 = vadd.f32 %v2585_v9, %v752_v49  ;;  %v832_v19 = vsel %vm2644_vm2, %v2556_v45, %v828_v56  ;;  %vm801_vm4 = vmor %vm799_vm3, %vm800_vm13  ;;  %v806_v48 = vor.u32 1.1754944e-38, %v805_v36  ;;  %v836_v54 = vor.u32 1.1754944e-38, %v835_v35 }
 0x285   :  { %v797_v10 = vmul.f32 %v1735_v27, %v796_v47  ;;  %vm804_vm5 = vcmp.eq.f32.partialorder %v803_v25, 8.507059e+37  ;;  %v758_v39 = vand.u32 2147483647, %v2529_v3  ;;  %v760_v38 = vand.u32 2147483648, %v2529_v3  ;;  %vm2664_vm7 = vmor %vm754_vm15, %vm755_vm1 }
 0x286   :  { %vm834_vm6 = vcmp.eq.f32.partialorder %v833_v61, 8.507059e+37  ;;  %v848_v2 = vmul.f32 %v747_v22, %v2228_v4  ;;  %v777_v55 = vsel %vm2618_vm11, %v776_v59, %v772_v58  ;;  %v757_v26 = vsel %vm2664_vm7, %v2585_v9, %v753_v23 }
 0x287   :  { %v798_v7 = vadd.f32 %v1735_v27, %v797_v10  ;;  %v1737_v32 = vpop.eup %1736  ;;  %v837_v13 = vsel %vm834_vm6, %v836_v54, %v832_v19  ;;  %v820_v4 = vand.u32 2147483648, %v2601_v60  ;;  %v818_v3 = vand.u32 2147483647, %v2601_v60 }
 0x288   :  { %v810_v28 = vmul.f32 %v1737_v32, %v2601_v60  ;;  %vm815_vm8 = vweird.f32 %v1737_v32  ;;  %v761_v44 = vor.u32 1.1754944e-38, %v760_v38  ;;  %v854_v5 = vmul.f32 %v837_v13, %v2297_v62 }
 0x289   :  { %v802_v63 = vsel %vm801_vm4, %v1735_v27, %v798_v7  ;;  %vm759_vm9 = vcmp.eq.f32.partialorder %v758_v39, 8.507059e+37  ;;  %vm814_vm10 = vweird.f32 %v2601_v60  ;;  %v850_v52 = vmul.f32 %v777_v55, %v2259_v21  ;;  %v1663_v60 = vld [vmem:[%s2708_s8] ss:$0 sm:$0xff] }
 0x28a   :  { %v807_v20 = vsel %vm804_vm5, %v806_v48, %v802_v63  ;;  %v811_v46 = vsub.f32 1.0, %v810_v28  ;;  %v762_v33 = vsel %vm759_vm9, %v761_v44, %v757_v26  ;;  %vm816_vm11 = vmor %vm814_vm10, %vm815_vm8  ;;  %v821_v9 = vor.u32 1.1754944e-38, %v820_v4 }
 0x28b   :  { %v852_v29 = vmul.f32 %v807_v20, %v2451_v1  ;;  %vm819_vm12 = vcmp.eq.f32.partialorder %v818_v3, 8.507059e+37  ;;  %v862_v17 = vpack.c.bf16 %v854_v5, %v850_v52  ;;  %v849_v6 = vmul.f32 %v762_v33, %v2334_v57 }
 0x28c   :  { %v812_v40 = vmul.f32 %v1737_v32, %v811_v46 }
 0x28d   :  { %v860_v31 = vpack.c.bf16 %v852_v29, %v848_v2 }
 0x28e   :  { %v813_v1 = vadd.f32 %v1737_v32, %v812_v40 }
 0x28f   :  { %1155 = vmatmul.bf16.gmra.mxu2 %v860_v31 }
 0x290   :  { %v817_v42 = vsel %vm816_vm11, %v1737_v32, %v813_v1 }
 0x291   :  { %v822_v27 = vsel %vm819_vm12, %v821_v9, %v817_v42 }
 0x292   :  { %v853_v11 = vmul.f32 %v822_v27, %v2543_v34 }
 0x293   :  { %1193 = vmatmul.bf16.vlgmr.msra.gmra.mxu1 %v862_v17 }
 0x294   :  { %v861_v62 = vpack.c.bf16 %v853_v11, %v849_v6 }
 0x296   :  { %1174 = vmatmul.bf16.gmra.mxu3 %v861_v62 }
 0x2dd   :  { %v1189_v50 = vpop.f32.mrf.mxu0 }
 0x2e5   :  { %v1191_v36 = vpop.f32.mrf.mxu0 }
 0x2f0   :  { %v1132_v37 = vpop.f32.mrf.mxu1 }
 0x2f1   :  { %v1133_v21 = vadd.f32 %v1663_v60, %v1132_v37 }
 0x2f7   :  { %v1151_v53 = vpop.f32.mrf.mxu2 }
 0x2f8   :  { %v1152_v59 = vadd.f32 %v1151_v53, %v1133_v21  ;;  %v1170_v24 = vpop.f32.mrf.mxu3  ;;  %v1134_v15 = vpop.f32.mrf.mxu1 }
 0x2f9   :  { %v1135_v30 = vadd.f32 %v1663_v60, %v1134_v15 }
 0x2fa   :  { %v1171_v0 = vadd.f32 %v1170_v24, %v1152_v59 }
 0x2fc   :  { %v1190_v41 = vadd.f32 %v1189_v50, %v1171_v0 }
 0x2fe   :  { %v1199_v57 = vadd.f32 %v1190_v41, %v1827_v12 }
 0x2ff   :  { %v1153_v34 = vpop.f32.mrf.mxu2 }
 0x300   :  { %1573 = vst [vmem:[%s2710_s10 + $0x8] sm:$0xff] %v1199_v57  ;;  %v1154_v47 = vadd.f32 %v1153_v34, %v1135_v30  ;;  %v1172_v49 = vpop.f32.mrf.mxu3  ;;  %v1137_v35 = vpop.f32.mrf.mxu1 }
 0x301   :  { %v1138_v12 = vadd.f32 %v1663_v60, %v1137_v35 }
 0x302   :  { %v1173_v56 = vadd.f32 %v1172_v49, %v1154_v47 }
 0x304   :  { %v1192_v10 = vadd.f32 %v1191_v36, %v1173_v56 }
 0x306   :  { %v1200_v25 = vadd.f32 %v1192_v10, %v1830_v14 }
 0x308   :  { %1574 = vst [vmem:[%s2710_s10 + $0x18] sm:$0xff] %v1200_v25  ;;  %v1139_v8 = vpop.f32.mrf.mxu1 }
 0x309   :  { %v1140_v22 = vadd.f32 %v1663_v60, %v1139_v8 }
 0x310   :  { %v1194_v58 = vpop.f32.mrf.mxu1 }
 0x312   :  { %v1156_v43 = vpop.f32.mrf.mxu2 }
 0x313   :  { %v1157_v61 = vadd.f32 %v1156_v43, %v1138_v12 }
 0x318   :  { %v1196_v54 = vpop.f32.mrf.mxu1 }
 0x319   :  { %v1175_v51 = vpop.f32.mrf.mxu3 }
 0x31a   :  { %v1176_v7 = vadd.f32 %v1175_v51, %v1157_v61  ;;  %v1158_v32 = vpop.f32.mrf.mxu2 }
 0x31b   :  { %v1159_v48 = vadd.f32 %v1158_v32, %v1140_v22 }
 0x31c   :  { %v1195_v23 = vadd.f32 %v1194_v58, %v1176_v7 }
 0x31e   :  { %v1201_v19 = vadd.f32 %v1195_v23, %v1833_v16 }
 0x320   :  { %1575 = vst [vmem:[%s2710_s10 + $0x28] sm:$0xff] %v1201_v19 }
 0x321   :  { %v1177_v14 = vpop.f32.mrf.mxu3 }
 0x322   :  { %v1178_v63 = vadd.f32 %v1177_v14, %v1159_v48 }
 0x324   :  { %v1197_v28 = vadd.f32 %v1196_v54, %v1178_v63 }
 0x326   :  { %v1202_v39 = vadd.f32 %v1197_v28, %v1836_v18 }
 0x328   :  { %1576 = vst [vmem:[%s2710_s10 + $0x38] sm:$0xff] %v1202_v39 }

</bundles_post_ra>
